<compile_context>
chip_gen: v5e
topology: v5e:2x2
jax: 0.10.0
libtpu: 0.0.40
codegen_flags: <defaults>
</compile_context>

<pallas_src>
import jax
import jax.numpy as jnp
import numpy as np
from jax import lax
from jax.experimental import pallas as pl
from jax.experimental.pallas import tpu as pltpu


def _clip_embed_kernel(ids_ref, tok_hbm, pos_ref, out_ref, stage, copy_sem):
    """One grid step = one tile of `bt` batch elements (full sequences).

    ids_ref : SMEM (B_pad*S,) int32 -- scalar-prefetched, flattened token ids
    tok_hbm : HBM  (V, E)           -- full token embedding table (pl.ANY)
    pos_ref : VMEM (S, E)           -- resident position embedding table
    out_ref : VMEM (bt, S, E)       -- output block for batch tile i
    stage   : VMEM (2, bt, S, E)    -- double-buffered gathered token rows
    copy_sem: DMA semaphores (2,)   -- one per staging slot
    """
    i = pl.program_id(0)
    num_tiles = pl.num_programs(0)
    _, bt, seq, _ = stage.shape

    def issue_tile(tile_idx, slot):
        # Gather the bt*seq token rows of `tile_idx` into staging slot `slot`.
        # All copies are row-sized and signal the same per-slot DMA semaphore,
        # and all scalar id reads happen here, before any .wait().
        base = tile_idx * (bt * seq)
        for j in range(bt):                          # bt is small & static
            row_base = base + j * seq

            def issue_row(s, carry):
                tok = ids_ref[row_base + s]
                pltpu.make_async_copy(
                    tok_hbm.at[pl.ds(tok, 1), :],
                    stage.at[slot, j, pl.ds(s, 1), :],
                    copy_sem.at[slot],
                ).start()
                return carry

            # Partial unroll: DMA issue is scalar/misc-slot bound; unrolling
            # raises the issue rate so the row gathers genuinely overlap.
            lax.fori_loop(0, seq, issue_row, 0, unroll=min(seq, 8))

    # Prime the pipeline: the very first tile has nothing in flight yet.
    @pl.when(i == 0)
    def _():
        issue_tile(0, 0)

    # Cross-step double buffering: kick off the *next* tile's gathers before
    # blocking on the current slot so their latency hides behind this step's
    # wait + add + (auto) output writeback.  The guard keeps the last step
    # from reading ids out of bounds (SMEM OOB is unchecked).
    @pl.when(i + 1 < num_tiles)
    def _():
        issue_tile(i + 1, (i + 1) & 1)

    # Single combined wait for the current slot.  Every row copy transfers the
    # same number of bytes and signals copy_sem[cur]; a DMA wait sized to the
    # whole (bt, seq, E) slot matches the total bytes, so one wait replaces
    # bt*seq scalar waits.  (Only dst + sem matter for the wait; the src here
    # is just a same-shaped dummy region.)
    cur = i & 1
    pltpu.make_async_copy(stage.at[1 - cur], stage.at[cur], copy_sem.at[cur]).wait()

    # Token rows + position table broadcast add (accumulate in f32, cast on
    # store), single dense (bt, S, E) store.
    toks = stage[cur].astype(jnp.float32)          # (bt, seq, E)
    pos = pos_ref[...].astype(jnp.float32)         # (seq, E)
    out_ref[...] = (toks + pos[None, :, :]).astype(out_ref.dtype)


def clip_embeddings(input_tokens, token_table, position_table, *, batch_tile=8):
    """input_tokens: (B, S) ints; token_table: (V, E); position_table: (P, E), P == S."""
    B, S = input_tokens.shape
    V, E = token_table.shape
    P, E2 = position_table.shape
    assert E == E2 and P == S, "seq length must equal num_positions (PyTorch broadcast rule)"

    bt = min(batch_tile, B)
    num_tiles = pl.cdiv(B, bt)
    B_pad = num_tiles * bt

    # Guard against out-of-range ids (an OOB row DMA is otherwise unchecked).
    # NOTE: this silently remaps bad ids to valid rows instead of erroring
    # like PyTorch would.
    ids = jnp.clip(input_tokens.astype(jnp.int32), 0, V - 1)
    if B_pad != B:
        # Pad rows gather token 0 (a valid row); they are sliced off below.
        ids = jnp.pad(ids, ((0, B_pad - B), (0, 0)))
    ids_flat = ids.reshape(B_pad * S)   # 1D SMEM prefetch: no 128-column padding

    grid_spec = pltpu.PrefetchScalarGridSpec(
        num_scalar_prefetch=1,
        grid=(num_tiles,),
        in_specs=[
            # Token table: left in HBM, gathered manually row-by-row.
            pl.BlockSpec(memory_space=pl.ANY),
            # Position table: constant block index -> loaded once, VMEM
            # resident for the whole grid.
            pl.BlockSpec((P, E), lambda i, ids: (0, 0)),
        ],
        out_specs=pl.BlockSpec((bt, S, E), lambda i, ids: (i, 0, 0)),
        scratch_shapes=[
            pltpu.VMEM((2, bt, S, E), token_table.dtype),   # double-buffered stage
            pltpu.SemaphoreType.DMA((2,)),                   # one sem per slot
        ],
    )

    out = pl.pallas_call(
        _clip_embed_kernel,
        out_shape=jax.ShapeDtypeStruct((B_pad, S, E), token_table.dtype),
        grid_spec=grid_spec,
        compiler_params=pltpu.CompilerParams(
            # Cross-step double-buffer carry (prime at i==0, prefetch i+1)
            # needs sequential grid execution.
            dimension_semantics=("arbitrary",),
        ),
    )(ids_flat, token_table, position_table)

    return out[:B] if B_pad != B else out


if __name__ == "__main__":
    # Small shapes consistent with the module.  E stays lane-dense (multiple
    # of 128) like real CLIP embed dims (512/768/1024); S plays num_positions
    # (77 in the real model).  batch=5 with batch_tile=2 exercises the
    # multi-step pipeline (3 grid steps, both staging slots, prefetch guard)
    # and the batch-padding path.
    batch = 5
    num_positions = 8
    embed_dim = 128
    vocab_size = 64

    key = jax.random.PRNGKey(0)
    k_tok, k_pos, k_ids = jax.random.split(key, 3)

    # Deterministic synthetic parameters (nn.Embedding-like N(0, 1) init).
    token_table = jax.random.normal(k_tok, (vocab_size, embed_dim), dtype=jnp.float32)
    position_table = jax.random.normal(k_pos, (num_positions, embed_dim), dtype=jnp.float32)

    input_tokens = jax.random.randint(
        k_ids, (batch, num_positions), minval=0, maxval=vocab_size, dtype=jnp.int32
    )

    out = clip_embeddings(input_tokens, token_table, position_table, batch_tile=2)
    out = jax.block_until_ready(out)

    # Reference check (plain JAX gather + broadcast add).
    ref = token_table[input_tokens] + position_table[None, :, :]
    np.testing.assert_allclose(np.asarray(out), np.asarray(ref), rtol=1e-6, atol=1e-6)

    print("KERNEL_OK")
</pallas_src>

<mosaic_0001>
module attributes {stable_mosaic.version = 11 : i64} {
  func.func @_clip_embed_kernel(%arg0: i32, %arg1: memref<48xi32, #tpu.memory_space<smem>>, %arg2: memref<64x128xf32, #tpu.memory_space<any>>, %arg3: memref<8x128xf32, #tpu.memory_space<vmem>>, %arg4: memref<2x8x128xf32, #tpu.memory_space<vmem>>, %arg5: memref<2x2x8x128xf32, #tpu.memory_space<vmem>>, %arg6: memref<2x!tpu.dma_semaphore, #tpu.memory_space<semaphore_mem>>) attributes {dimension_semantics = [#tpu.dimension_semantics<arbitrary>], iteration_bounds = array<i64: 3>, scalar_prefetch = 1 : i64, scratch_operands = 2 : i64, tpu.core_type = #tpu.core_type<tc>, window_params = [{}, {pipeline_mode = #tpu.pipeline_mode<synchronous>, transform_indices = @transform_1, window_bounds = array<i64: 8, 128>}, {transform_indices = @transform_2, window_bounds = array<i64: 2, 8, 128>}]} {
    %c0_i32 = arith.constant 0 : i32
    %0 = arith.cmpi eq, %arg0, %c0_i32 : i32
    %1 = arith.extui %0 : i1 to i32
    %c0_i32_0 = arith.constant 0 : i32
    %2 = arith.cmpi ne, %1, %c0_i32_0 : i32
    scf.if %2 {
      %c0_i32_17 = arith.constant 0 : i32
      %c0_i32_18 = arith.constant 0 : i32
      %23 = arith.addi %c0_i32_18, %c0_i32_17 : i32
      %24 = arith.index_cast %23 : i32 to index
      %25 = memref.load %arg1[%24] : memref<48xi32, #tpu.memory_space<smem>>
      %c0_i32_19 = arith.constant 0 : i32
      %c0_i32_20 = arith.constant 0 : i32
      %c0_i32_21 = arith.constant 0 : i32
      %c0_i32_22 = arith.constant 0 : i32
      %26 = tpu.memref_slice %arg2[%25, %c0_i32_22] : memref<64x128xf32, #tpu.memory_space<any>> -> memref<1x128xf32, #tpu.memory_space<any>>
      %c0_i32_23 = arith.constant 0 : i32
      %27 = tpu.memref_slice %arg5[%c0_i32_19, %c0_i32_20, %c0_i32_17, %c0_i32_23] : memref<2x2x8x128xf32, #tpu.memory_space<vmem>> -> memref<1x1x1x128xf32, #tpu.memory_space<vmem>>
      %28 = tpu.memref_squeeze %27 : memref<1x1x1x128xf32, #tpu.memory_space<vmem>> -> memref<1x128xf32, #tpu.memory_space<vmem>>
      %29 = tpu.memref_slice %arg6[%c0_i32_21] : memref<2x!tpu.dma_semaphore, #tpu.memory_space<semaphore_mem>> -> memref<1x!tpu.dma_semaphore, #tpu.memory_space<semaphore_mem>>
      %30 = tpu.memref_squeeze %29 : memref<1x!tpu.dma_semaphore, #tpu.memory_space<semaphore_mem>> -> memref<!tpu.dma_semaphore, #tpu.memory_space<semaphore_mem>>
      tpu.enqueue_dma source(%26 : memref<1x128xf32, #tpu.memory_space<any>>) target(%28 : memref<1x128xf32, #tpu.memory_space<vmem>>) target_semaphore(%30 : memref<!tpu.dma_semaphore, #tpu.memory_space<semaphore_mem>>)
      %c1_i32_24 = arith.constant 1 : i32
      %c0_i32_25 = arith.constant 0 : i32
      %31 = arith.addi %c0_i32_25, %c1_i32_24 : i32
      %32 = arith.index_cast %31 : i32 to index
      %33 = memref.load %arg1[%32] : memref<48xi32, #tpu.memory_space<smem>>
      %c0_i32_26 = arith.constant 0 : i32
      %c0_i32_27 = arith.constant 0 : i32
      %c0_i32_28 = arith.constant 0 : i32
      %c0_i32_29 = arith.constant 0 : i32
      %34 = tpu.memref_slice %arg2[%33, %c0_i32_29] : memref<64x128xf32, #tpu.memory_space<any>> -> memref<1x128xf32, #tpu.memory_space<any>>
      %c0_i32_30 = arith.constant 0 : i32
      %35 = tpu.memref_slice %arg5[%c0_i32_26, %c0_i32_27, %c1_i32_24, %c0_i32_30] : memref<2x2x8x128xf32, #tpu.memory_space<vmem>> -> memref<1x1x1x128xf32, #tpu.memory_space<vmem>>
      %36 = tpu.memref_squeeze %35 : memref<1x1x1x128xf32, #tpu.memory_space<vmem>> -> memref<1x128xf32, #tpu.memory_space<vmem>>
      %37 = tpu.memref_slice %arg6[%c0_i32_28] : memref<2x!tpu.dma_semaphore, #tpu.memory_space<semaphore_mem>> -> memref<1x!tpu.dma_semaphore, #tpu.memory_space<semaphore_mem>>
      %38 = tpu.memref_squeeze %37 : memref<1x!tpu.dma_semaphore, #tpu.memory_space<semaphore_mem>> -> memref<!tpu.dma_semaphore, #tpu.memory_space<semaphore_mem>>
      tpu.enqueue_dma source(%34 : memref<1x128xf32, #tpu.memory_space<any>>) target(%36 : memref<1x128xf32, #tpu.memory_space<vmem>>) target_semaphore(%38 : memref<!tpu.dma_semaphore, #tpu.memory_space<semaphore_mem>>)
      %c2_i32 = arith.constant 2 : i32
      %c0_i32_31 = arith.constant 0 : i32
      %39 = arith.addi %c0_i32_31, %c2_i32 : i32
      %40 = arith.index_cast %39 : i32 to index
      %41 = memref.load %arg1[%40] : memref<48xi32, #tpu.memory_space<smem>>
      %c0_i32_32 = arith.constant 0 : i32
      %c0_i32_33 = arith.constant 0 : i32
      %c0_i32_34 = arith.constant 0 : i32
      %c0_i32_35 = arith.constant 0 : i32
      %42 = tpu.memref_slice %arg2[%41, %c0_i32_35] : memref<64x128xf32, #tpu.memory_space<any>> -> memref<1x128xf32, #tpu.memory_space<any>>
      %c0_i32_36 = arith.constant 0 : i32
      %43 = tpu.memref_slice %arg5[%c0_i32_32, %c0_i32_33, %c2_i32, %c0_i32_36] : memref<2x2x8x128xf32, #tpu.memory_space<vmem>> -> memref<1x1x1x128xf32, #tpu.memory_space<vmem>>
      %44 = tpu.memref_squeeze %43 : memref<1x1x1x128xf32, #tpu.memory_space<vmem>> -> memref<1x128xf32, #tpu.memory_space<vmem>>
      %45 = tpu.memref_slice %arg6[%c0_i32_34] : memref<2x!tpu.dma_semaphore, #tpu.memory_space<semaphore_mem>> -> memref<1x!tpu.dma_semaphore, #tpu.memory_space<semaphore_mem>>
      %46 = tpu.memref_squeeze %45 : memref<1x!tpu.dma_semaphore, #tpu.memory_space<semaphore_mem>> -> memref<!tpu.dma_semaphore, #tpu.memory_space<semaphore_mem>>
      tpu.enqueue_dma source(%42 : memref<1x128xf32, #tpu.memory_space<any>>) target(%44 : memref<1x128xf32, #tpu.memory_space<vmem>>) target_semaphore(%46 : memref<!tpu.dma_semaphore, #tpu.memory_space<semaphore_mem>>)
      %c3_i32_37 = arith.constant 3 : i32
      %c0_i32_38 = arith.constant 0 : i32
      %47 = arith.addi %c0_i32_38, %c3_i32_37 : i32
      %48 = arith.index_cast %47 : i32 to index
      %49 = memref.load %arg1[%48] : memref<48xi32, #tpu.memory_space<smem>>
      %c0_i32_39 = arith.constant 0 : i32
      %c0_i32_40 = arith.constant 0 : i32
      %c0_i32_41 = arith.constant 0 : i32
      %c0_i32_42 = arith.constant 0 : i32
      %50 = tpu.memref_slice %arg2[%49, %c0_i32_42] : memref<64x128xf32, #tpu.memory_space<any>> -> memref<1x128xf32, #tpu.memory_space<any>>
      %c0_i32_43 = arith.constant 0 : i32
      %51 = tpu.memref_slice %arg5[%c0_i32_39, %c0_i32_40, %c3_i32_37, %c0_i32_43] : memref<2x2x8x128xf32, #tpu.memory_space<vmem>> -> memref<1x1x1x128xf32, #tpu.memory_space<vmem>>
      %52 = tpu.memref_squeeze %51 : memref<1x1x1x128xf32, #tpu.memory_space<vmem>> -> memref<1x128xf32, #tpu.memory_space<vmem>>
      %53 = tpu.memref_slice %arg6[%c0_i32_41] : memref<2x!tpu.dma_semaphore, #tpu.memory_space<semaphore_mem>> -> memref<1x!tpu.dma_semaphore, #tpu.memory_space<semaphore_mem>>
      %54 = tpu.memref_squeeze %53 : memref<1x!tpu.dma_semaphore, #tpu.memory_space<semaphore_mem>> -> memref<!tpu.dma_semaphore, #tpu.memory_space<semaphore_mem>>
      tpu.enqueue_dma source(%50 : memref<1x128xf32, #tpu.memory_space<any>>) target(%52 : memref<1x128xf32, #tpu.memory_space<vmem>>) target_semaphore(%54 : memref<!tpu.dma_semaphore, #tpu.memory_space<semaphore_mem>>)
      %c4_i32 = arith.constant 4 : i32
      %c0_i32_44 = arith.constant 0 : i32
      %55 = arith.addi %c0_i32_44, %c4_i32 : i32
      %56 = arith.index_cast %55 : i32 to index
      %57 = memref.load %arg1[%56] : memref<48xi32, #tpu.memory_space<smem>>
      %c0_i32_45 = arith.constant 0 : i32
      %c0_i32_46 = arith.constant 0 : i32
      %c0_i32_47 = arith.constant 0 : i32
      %c0_i32_48 = arith.constant 0 : i32
      %58 = tpu.memref_slice %arg2[%57, %c0_i32_48] : memref<64x128xf32, #tpu.memory_space<any>> -> memref<1x128xf32, #tpu.memory_space<any>>
      %c0_i32_49 = arith.constant 0 : i32
      %59 = tpu.memref_slice %arg5[%c0_i32_45, %c0_i32_46, %c4_i32, %c0_i32_49] : memref<2x2x8x128xf32, #tpu.memory_space<vmem>> -> memref<1x1x1x128xf32, #tpu.memory_space<vmem>>
      %60 = tpu.memref_squeeze %59 : memref<1x1x1x128xf32, #tpu.memory_space<vmem>> -> memref<1x128xf32, #tpu.memory_space<vmem>>
      %61 = tpu.memref_slice %arg6[%c0_i32_47] : memref<2x!tpu.dma_semaphore, #tpu.memory_space<semaphore_mem>> -> memref<1x!tpu.dma_semaphore, #tpu.memory_space<semaphore_mem>>
      %62 = tpu.memref_squeeze %61 : memref<1x!tpu.dma_semaphore, #tpu.memory_space<semaphore_mem>> -> memref<!tpu.dma_semaphore, #tpu.memory_space<semaphore_mem>>
      tpu.enqueue_dma source(%58 : memref<1x128xf32, #tpu.memory_space<any>>) target(%60 : memref<1x128xf32, #tpu.memory_space<vmem>>) target_semaphore(%62 : memref<!tpu.dma_semaphore, #tpu.memory_space<semaphore_mem>>)
      %c5_i32 = arith.constant 5 : i32
      %c0_i32_50 = arith.constant 0 : i32
      %63 = arith.addi %c0_i32_50, %c5_i32 : i32
      %64 = arith.index_cast %63 : i32 to index
      %65 = memref.load %arg1[%64] : memref<48xi32, #tpu.memory_space<smem>>
      %c0_i32_51 = arith.constant 0 : i32
      %c0_i32_52 = arith.constant 0 : i32
      %c0_i32_53 = arith.constant 0 : i32
      %c0_i32_54 = arith.constant 0 : i32
      %66 = tpu.memref_slice %arg2[%65, %c0_i32_54] : memref<64x128xf32, #tpu.memory_space<any>> -> memref<1x128xf32, #tpu.memory_space<any>>
      %c0_i32_55 = arith.constant 0 : i32
      %67 = tpu.memref_slice %arg5[%c0_i32_51, %c0_i32_52, %c5_i32, %c0_i32_55] : memref<2x2x8x128xf32, #tpu.memory_space<vmem>> -> memref<1x1x1x128xf32, #tpu.memory_space<vmem>>
      %68 = tpu.memref_squeeze %67 : memref<1x1x1x128xf32, #tpu.memory_space<vmem>> -> memref<1x128xf32, #tpu.memory_space<vmem>>
      %69 = tpu.memref_slice %arg6[%c0_i32_53] : memref<2x!tpu.dma_semaphore, #tpu.memory_space<semaphore_mem>> -> memref<1x!tpu.dma_semaphore, #tpu.memory_space<semaphore_mem>>
      %70 = tpu.memref_squeeze %69 : memref<1x!tpu.dma_semaphore, #tpu.memory_space<semaphore_mem>> -> memref<!tpu.dma_semaphore, #tpu.memory_space<semaphore_mem>>
      tpu.enqueue_dma source(%66 : memref<1x128xf32, #tpu.memory_space<any>>) target(%68 : memref<1x128xf32, #tpu.memory_space<vmem>>) target_semaphore(%70 : memref<!tpu.dma_semaphore, #tpu.memory_space<semaphore_mem>>)
      %c6_i32 = arith.constant 6 : i32
      %c0_i32_56 = arith.constant 0 : i32
      %71 = arith.addi %c0_i32_56, %c6_i32 : i32
      %72 = arith.index_cast %71 : i32 to index
      %73 = memref.load %arg1[%72] : memref<48xi32, #tpu.memory_space<smem>>
      %c0_i32_57 = arith.constant 0 : i32
      %c0_i32_58 = arith.constant 0 : i32
      %c0_i32_59 = arith.constant 0 : i32
      %c0_i32_60 = arith.constant 0 : i32
      %74 = tpu.memref_slice %arg2[%73, %c0_i32_60] : memref<64x128xf32, #tpu.memory_space<any>> -> memref<1x128xf32, #tpu.memory_space<any>>
      %c0_i32_61 = arith.constant 0 : i32
      %75 = tpu.memref_slice %arg5[%c0_i32_57, %c0_i32_58, %c6_i32, %c0_i32_61] : memref<2x2x8x128xf32, #tpu.memory_space<vmem>> -> memref<1x1x1x128xf32, #tpu.memory_space<vmem>>
      %76 = tpu.memref_squeeze %75 : memref<1x1x1x128xf32, #tpu.memory_space<vmem>> -> memref<1x128xf32, #tpu.memory_space<vmem>>
      %77 = tpu.memref_slice %arg6[%c0_i32_59] : memref<2x!tpu.dma_semaphore, #tpu.memory_space<semaphore_mem>> -> memref<1x!tpu.dma_semaphore, #tpu.memory_space<semaphore_mem>>
      %78 = tpu.memref_squeeze %77 : memref<1x!tpu.dma_semaphore, #tpu.memory_space<semaphore_mem>> -> memref<!tpu.dma_semaphore, #tpu.memory_space<semaphore_mem>>
      tpu.enqueue_dma source(%74 : memref<1x128xf32, #tpu.memory_space<any>>) target(%76 : memref<1x128xf32, #tpu.memory_space<vmem>>) target_semaphore(%78 : memref<!tpu.dma_semaphore, #tpu.memory_space<semaphore_mem>>)
      %c7_i32 = arith.constant 7 : i32
      %c0_i32_62 = arith.constant 0 : i32
      %79 = arith.addi %c0_i32_62, %c7_i32 : i32
      %80 = arith.index_cast %79 : i32 to index
      %81 = memref.load %arg1[%80] : memref<48xi32, #tpu.memory_space<smem>>
      %c0_i32_63 = arith.constant 0 : i32
      %c0_i32_64 = arith.constant 0 : i32
      %c0_i32_65 = arith.constant 0 : i32
      %c0_i32_66 = arith.constant 0 : i32
      %82 = tpu.memref_slice %arg2[%81, %c0_i32_66] : memref<64x128xf32, #tpu.memory_space<any>> -> memref<1x128xf32, #tpu.memory_space<any>>
      %c0_i32_67 = arith.constant 0 : i32
      %83 = tpu.memref_slice %arg5[%c0_i32_63, %c0_i32_64, %c7_i32, %c0_i32_67] : memref<2x2x8x128xf32, #tpu.memory_space<vmem>> -> memref<1x1x1x128xf32, #tpu.memory_space<vmem>>
      %84 = tpu.memref_squeeze %83 : memref<1x1x1x128xf32, #tpu.memory_space<vmem>> -> memref<1x128xf32, #tpu.memory_space<vmem>>
      %85 = tpu.memref_slice %arg6[%c0_i32_65] : memref<2x!tpu.dma_semaphore, #tpu.memory_space<semaphore_mem>> -> memref<1x!tpu.dma_semaphore, #tpu.memory_space<semaphore_mem>>
      %86 = tpu.memref_squeeze %85 : memref<1x!tpu.dma_semaphore, #tpu.memory_space<semaphore_mem>> -> memref<!tpu.dma_semaphore, #tpu.memory_space<semaphore_mem>>
      tpu.enqueue_dma source(%82 : memref<1x128xf32, #tpu.memory_space<any>>) target(%84 : memref<1x128xf32, #tpu.memory_space<vmem>>) target_semaphore(%86 : memref<!tpu.dma_semaphore, #tpu.memory_space<semaphore_mem>>)
      %c8_i32 = arith.constant 8 : i32
      %c0_i32_68 = arith.constant 0 : i32
      %c8_i32_69 = arith.constant 8 : i32
      %87 = arith.addi %c8_i32_69, %c0_i32_68 : i32
      %88 = arith.index_cast %87 : i32 to index
      %89 = memref.load %arg1[%88] : memref<48xi32, #tpu.memory_space<smem>>
      %c0_i32_70 = arith.constant 0 : i32
      %c1_i32_71 = arith.constant 1 : i32
      %c0_i32_72 = arith.constant 0 : i32
      %c0_i32_73 = arith.constant 0 : i32
      %90 = tpu.memref_slice %arg2[%89, %c0_i32_73] : memref<64x128xf32, #tpu.memory_space<any>> -> memref<1x128xf32, #tpu.memory_space<any>>
      %c0_i32_74 = arith.constant 0 : i32
      %91 = tpu.memref_slice %arg5[%c0_i32_70, %c1_i32_71, %c0_i32_68, %c0_i32_74] : memref<2x2x8x128xf32, #tpu.memory_space<vmem>> -> memref<1x1x1x128xf32, #tpu.memory_space<vmem>>
      %92 = tpu.memref_squeeze %91 : memref<1x1x1x128xf32, #tpu.memory_space<vmem>> -> memref<1x128xf32, #tpu.memory_space<vmem>>
      %93 = tpu.memref_slice %arg6[%c0_i32_72] : memref<2x!tpu.dma_semaphore, #tpu.memory_space<semaphore_mem>> -> memref<1x!tpu.dma_semaphore, #tpu.memory_space<semaphore_mem>>
      %94 = tpu.memref_squeeze %93 : memref<1x!tpu.dma_semaphore, #tpu.memory_space<semaphore_mem>> -> memref<!tpu.dma_semaphore, #tpu.memory_space<semaphore_mem>>
      tpu.enqueue_dma source(%90 : memref<1x128xf32, #tpu.memory_space<any>>) target(%92 : memref<1x128xf32, #tpu.memory_space<vmem>>) target_semaphore(%94 : memref<!tpu.dma_semaphore, #tpu.memory_space<semaphore_mem>>)
      %c1_i32_75 = arith.constant 1 : i32
      %c8_i32_76 = arith.constant 8 : i32
      %95 = arith.addi %c8_i32_76, %c1_i32_75 : i32
      %96 = arith.index_cast %95 : i32 to index
      %97 = memref.load %arg1[%96] : memref<48xi32, #tpu.memory_space<smem>>
      %c0_i32_77 = arith.constant 0 : i32
      %c1_i32_78 = arith.constant 1 : i32
      %c0_i32_79 = arith.constant 0 : i32
      %c0_i32_80 = arith.constant 0 : i32
      %98 = tpu.memref_slice %arg2[%97, %c0_i32_80] : memref<64x128xf32, #tpu.memory_space<any>> -> memref<1x128xf32, #tpu.memory_space<any>>
      %c0_i32_81 = arith.constant 0 : i32
      %99 = tpu.memref_slice %arg5[%c0_i32_77, %c1_i32_78, %c1_i32_75, %c0_i32_81] : memref<2x2x8x128xf32, #tpu.memory_space<vmem>> -> memref<1x1x1x128xf32, #tpu.memory_space<vmem>>
      %100 = tpu.memref_squeeze %99 : memref<1x1x1x128xf32, #tpu.memory_space<vmem>> -> memref<1x128xf32, #tpu.memory_space<vmem>>
      %101 = tpu.memref_slice %arg6[%c0_i32_79] : memref<2x!tpu.dma_semaphore, #tpu.memory_space<semaphore_mem>> -> memref<1x!tpu.dma_semaphore, #tpu.memory_space<semaphore_mem>>
      %102 = tpu.memref_squeeze %101 : memref<1x!tpu.dma_semaphore, #tpu.memory_space<semaphore_mem>> -> memref<!tpu.dma_semaphore, #tpu.memory_space<semaphore_mem>>
      tpu.enqueue_dma source(%98 : memref<1x128xf32, #tpu.memory_space<any>>) target(%100 : memref<1x128xf32, #tpu.memory_space<vmem>>) target_semaphore(%102 : memref<!tpu.dma_semaphore, #tpu.memory_space<semaphore_mem>>)
      %c2_i32_82 = arith.constant 2 : i32
      %c8_i32_83 = arith.constant 8 : i32
      %103 = arith.addi %c8_i32_83, %c2_i32_82 : i32
      %104 = arith.index_cast %103 : i32 to index
      %105 = memref.load %arg1[%104] : memref<48xi32, #tpu.memory_space<smem>>
      %c0_i32_84 = arith.constant 0 : i32
      %c1_i32_85 = arith.constant 1 : i32
      %c0_i32_86 = arith.constant 0 : i32
      %c0_i32_87 = arith.constant 0 : i32
      %106 = tpu.memref_slice %arg2[%105, %c0_i32_87] : memref<64x128xf32, #tpu.memory_space<any>> -> memref<1x128xf32, #tpu.memory_space<any>>
      %c0_i32_88 = arith.constant 0 : i32
      %107 = tpu.memref_slice %arg5[%c0_i32_84, %c1_i32_85, %c2_i32_82, %c0_i32_88] : memref<2x2x8x128xf32, #tpu.memory_space<vmem>> -> memref<1x1x1x128xf32, #tpu.memory_space<vmem>>
      %108 = tpu.memref_squeeze %107 : memref<1x1x1x128xf32, #tpu.memory_space<vmem>> -> memref<1x128xf32, #tpu.memory_space<vmem>>
      %109 = tpu.memref_slice %arg6[%c0_i32_86] : memref<2x!tpu.dma_semaphore, #tpu.memory_space<semaphore_mem>> -> memref<1x!tpu.dma_semaphore, #tpu.memory_space<semaphore_mem>>
      %110 = tpu.memref_squeeze %109 : memref<1x!tpu.dma_semaphore, #tpu.memory_space<semaphore_mem>> -> memref<!tpu.dma_semaphore, #tpu.memory_space<semaphore_mem>>
      tpu.enqueue_dma source(%106 : memref<1x128xf32, #tpu.memory_space<any>>) target(%108 : memref<1x128xf32, #tpu.memory_space<vmem>>) target_semaphore(%110 : memref<!tpu.dma_semaphore, #tpu.memory_space<semaphore_mem>>)
      %c3_i32_89 = arith.constant 3 : i32
      %c8_i32_90 = arith.constant 8 : i32
      %111 = arith.addi %c8_i32_90, %c3_i32_89 : i32
      %112 = arith.index_cast %111 : i32 to index
      %113 = memref.load %arg1[%112] : memref<48xi32, #tpu.memory_space<smem>>
      %c0_i32_91 = arith.constant 0 : i32
      %c1_i32_92 = arith.constant 1 : i32
      %c0_i32_93 = arith.constant 0 : i32
      %c0_i32_94 = arith.constant 0 : i32
      %114 = tpu.memref_slice %arg2[%113, %c0_i32_94] : memref<64x128xf32, #tpu.memory_space<any>> -> memref<1x128xf32, #tpu.memory_space<any>>
      %c0_i32_95 = arith.constant 0 : i32
      %115 = tpu.memref_slice %arg5[%c0_i32_91, %c1_i32_92, %c3_i32_89, %c0_i32_95] : memref<2x2x8x128xf32, #tpu.memory_space<vmem>> -> memref<1x1x1x128xf32, #tpu.memory_space<vmem>>
      %116 = tpu.memref_squeeze %115 : memref<1x1x1x128xf32, #tpu.memory_space<vmem>> -> memref<1x128xf32, #tpu.memory_space<vmem>>
      %117 = tpu.memref_slice %arg6[%c0_i32_93] : memref<2x!tpu.dma_semaphore, #tpu.memory_space<semaphore_mem>> -> memref<1x!tpu.dma_semaphore, #tpu.memory_space<semaphore_mem>>
      %118 = tpu.memref_squeeze %117 : memref<1x!tpu.dma_semaphore, #tpu.memory_space<semaphore_mem>> -> memref<!tpu.dma_semaphore, #tpu.memory_space<semaphore_mem>>
      tpu.enqueue_dma source(%114 : memref<1x128xf32, #tpu.memory_space<any>>) target(%116 : memref<1x128xf32, #tpu.memory_space<vmem>>) target_semaphore(%118 : memref<!tpu.dma_semaphore, #tpu.memory_space<semaphore_mem>>)
      %c4_i32_96 = arith.constant 4 : i32
      %c8_i32_97 = arith.constant 8 : i32
      %119 = arith.addi %c8_i32_97, %c4_i32_96 : i32
      %120 = arith.index_cast %119 : i32 to index
      %121 = memref.load %arg1[%120] : memref<48xi32, #tpu.memory_space<smem>>
      %c0_i32_98 = arith.constant 0 : i32
      %c1_i32_99 = arith.constant 1 : i32
      %c0_i32_100 = arith.constant 0 : i32
      %c0_i32_101 = arith.constant 0 : i32
      %122 = tpu.memref_slice %arg2[%121, %c0_i32_101] : memref<64x128xf32, #tpu.memory_space<any>> -> memref<1x128xf32, #tpu.memory_space<any>>
      %c0_i32_102 = arith.constant 0 : i32
      %123 = tpu.memref_slice %arg5[%c0_i32_98, %c1_i32_99, %c4_i32_96, %c0_i32_102] : memref<2x2x8x128xf32, #tpu.memory_space<vmem>> -> memref<1x1x1x128xf32, #tpu.memory_space<vmem>>
      %124 = tpu.memref_squeeze %123 : memref<1x1x1x128xf32, #tpu.memory_space<vmem>> -> memref<1x128xf32, #tpu.memory_space<vmem>>
      %125 = tpu.memref_slice %arg6[%c0_i32_100] : memref<2x!tpu.dma_semaphore, #tpu.memory_space<semaphore_mem>> -> memref<1x!tpu.dma_semaphore, #tpu.memory_space<semaphore_mem>>
      %126 = tpu.memref_squeeze %125 : memref<1x!tpu.dma_semaphore, #tpu.memory_space<semaphore_mem>> -> memref<!tpu.dma_semaphore, #tpu.memory_space<semaphore_mem>>
      tpu.enqueue_dma source(%122 : memref<1x128xf32, #tpu.memory_space<any>>) target(%124 : memref<1x128xf32, #tpu.memory_space<vmem>>) target_semaphore(%126 : memref<!tpu.dma_semaphore, #tpu.memory_space<semaphore_mem>>)
      %c5_i32_103 = arith.constant 5 : i32
      %c8_i32_104 = arith.constant 8 : i32
      %127 = arith.addi %c8_i32_104, %c5_i32_103 : i32
      %128 = arith.index_cast %127 : i32 to index
      %129 = memref.load %arg1[%128] : memref<48xi32, #tpu.memory_space<smem>>
      %c0_i32_105 = arith.constant 0 : i32
      %c1_i32_106 = arith.constant 1 : i32
      %c0_i32_107 = arith.constant 0 : i32
      %c0_i32_108 = arith.constant 0 : i32
      %130 = tpu.memref_slice %arg2[%129, %c0_i32_108] : memref<64x128xf32, #tpu.memory_space<any>> -> memref<1x128xf32, #tpu.memory_space<any>>
      %c0_i32_109 = arith.constant 0 : i32
      %131 = tpu.memref_slice %arg5[%c0_i32_105, %c1_i32_106, %c5_i32_103, %c0_i32_109] : memref<2x2x8x128xf32, #tpu.memory_space<vmem>> -> memref<1x1x1x128xf32, #tpu.memory_space<vmem>>
      %132 = tpu.memref_squeeze %131 : memref<1x1x1x128xf32, #tpu.memory_space<vmem>> -> memref<1x128xf32, #tpu.memory_space<vmem>>
      %133 = tpu.memref_slice %arg6[%c0_i32_107] : memref<2x!tpu.dma_semaphore, #tpu.memory_space<semaphore_mem>> -> memref<1x!tpu.dma_semaphore, #tpu.memory_space<semaphore_mem>>
      %134 = tpu.memref_squeeze %133 : memref<1x!tpu.dma_semaphore, #tpu.memory_space<semaphore_mem>> -> memref<!tpu.dma_semaphore, #tpu.memory_space<semaphore_mem>>
      tpu.enqueue_dma source(%130 : memref<1x128xf32, #tpu.memory_space<any>>) target(%132 : memref<1x128xf32, #tpu.memory_space<vmem>>) target_semaphore(%134 : memref<!tpu.dma_semaphore, #tpu.memory_space<semaphore_mem>>)
      %c6_i32_110 = arith.constant 6 : i32
      %c8_i32_111 = arith.constant 8 : i32
      %135 = arith.addi %c8_i32_111, %c6_i32_110 : i32
      %136 = arith.index_cast %135 : i32 to index
      %137 = memref.load %arg1[%136] : memref<48xi32, #tpu.memory_space<smem>>
      %c0_i32_112 = arith.constant 0 : i32
      %c1_i32_113 = arith.constant 1 : i32
      %c0_i32_114 = arith.constant 0 : i32
      %c0_i32_115 = arith.constant 0 : i32
      %138 = tpu.memref_slice %arg2[%137, %c0_i32_115] : memref<64x128xf32, #tpu.memory_space<any>> -> memref<1x128xf32, #tpu.memory_space<any>>
      %c0_i32_116 = arith.constant 0 : i32
      %139 = tpu.memref_slice %arg5[%c0_i32_112, %c1_i32_113, %c6_i32_110, %c0_i32_116] : memref<2x2x8x128xf32, #tpu.memory_space<vmem>> -> memref<1x1x1x128xf32, #tpu.memory_space<vmem>>
      %140 = tpu.memref_squeeze %139 : memref<1x1x1x128xf32, #tpu.memory_space<vmem>> -> memref<1x128xf32, #tpu.memory_space<vmem>>
      %141 = tpu.memref_slice %arg6[%c0_i32_114] : memref<2x!tpu.dma_semaphore, #tpu.memory_space<semaphore_mem>> -> memref<1x!tpu.dma_semaphore, #tpu.memory_space<semaphore_mem>>
      %142 = tpu.memref_squeeze %141 : memref<1x!tpu.dma_semaphore, #tpu.memory_space<semaphore_mem>> -> memref<!tpu.dma_semaphore, #tpu.memory_space<semaphore_mem>>
      tpu.enqueue_dma source(%138 : memref<1x128xf32, #tpu.memory_space<any>>) target(%140 : memref<1x128xf32, #tpu.memory_space<vmem>>) target_semaphore(%142 : memref<!tpu.dma_semaphore, #tpu.memory_space<semaphore_mem>>)
      %c7_i32_117 = arith.constant 7 : i32
      %c8_i32_118 = arith.constant 8 : i32
      %143 = arith.addi %c8_i32_118, %c7_i32_117 : i32
      %144 = arith.index_cast %143 : i32 to index
      %145 = memref.load %arg1[%144] : memref<48xi32, #tpu.memory_space<smem>>
      %c0_i32_119 = arith.constant 0 : i32
      %c1_i32_120 = arith.constant 1 : i32
      %c0_i32_121 = arith.constant 0 : i32
      %c0_i32_122 = arith.constant 0 : i32
      %146 = tpu.memref_slice %arg2[%145, %c0_i32_122] : memref<64x128xf32, #tpu.memory_space<any>> -> memref<1x128xf32, #tpu.memory_space<any>>
      %c0_i32_123 = arith.constant 0 : i32
      %147 = tpu.memref_slice %arg5[%c0_i32_119, %c1_i32_120, %c7_i32_117, %c0_i32_123] : memref<2x2x8x128xf32, #tpu.memory_space<vmem>> -> memref<1x1x1x128xf32, #tpu.memory_space<vmem>>
      %148 = tpu.memref_squeeze %147 : memref<1x1x1x128xf32, #tpu.memory_space<vmem>> -> memref<1x128xf32, #tpu.memory_space<vmem>>
      %149 = tpu.memref_slice %arg6[%c0_i32_121] : memref<2x!tpu.dma_semaphore, #tpu.memory_space<semaphore_mem>> -> memref<1x!tpu.dma_semaphore, #tpu.memory_space<semaphore_mem>>
      %150 = tpu.memref_squeeze %149 : memref<1x!tpu.dma_semaphore, #tpu.memory_space<semaphore_mem>> -> memref<!tpu.dma_semaphore, #tpu.memory_space<semaphore_mem>>
      tpu.enqueue_dma source(%146 : memref<1x128xf32, #tpu.memory_space<any>>) target(%148 : memref<1x128xf32, #tpu.memory_space<vmem>>) target_semaphore(%150 : memref<!tpu.dma_semaphore, #tpu.memory_space<semaphore_mem>>)
      %c8_i32_124 = arith.constant 8 : i32
    } else {
    }
    %c1_i32 = arith.constant 1 : i32
    %3 = arith.addi %arg0, %c1_i32 : i32
    %c3_i32 = arith.constant 3 : i32
    %4 = arith.cmpi slt, %3, %c3_i32 : i32
    %5 = arith.extui %4 : i1 to i32
    %c0_i32_1 = arith.constant 0 : i32
    %6 = arith.cmpi ne, %5, %c0_i32_1 : i32
    scf.if %6 {
      %c1_i32_17 = arith.constant 1 : i32
      %23 = arith.addi %arg0, %c1_i32_17 : i32
      %c1_i32_18 = arith.constant 1 : i32
      %24 = arith.addi %arg0, %c1_i32_18 : i32
      %c1_i32_19 = arith.constant 1 : i32
      %25 = arith.andi %24, %c1_i32_19 : i32
      %c16_i32 = arith.constant 16 : i32
      %26 = arith.muli %23, %c16_i32 : i32
      %c0_i32_20 = arith.constant 0 : i32
      %27 = arith.addi %26, %c0_i32_20 : i32
      %c0_i32_21 = arith.constant 0 : i32
      %28 = arith.addi %27, %c0_i32_21 : i32
      %29 = arith.index_cast %28 : i32 to index
      %30 = memref.load %arg1[%29] : memref<48xi32, #tpu.memory_space<smem>>
      %c0_i32_22 = arith.constant 0 : i32
      %c0_i32_23 = arith.constant 0 : i32
      %31 = tpu.memref_slice %arg2[%30, %c0_i32_23] : memref<64x128xf32, #tpu.memory_space<any>> -> memref<1x128xf32, #tpu.memory_space<any>>
      %c0_i32_24 = arith.constant 0 : i32
      %32 = tpu.memref_slice %arg5[%25, %c0_i32_22, %c0_i32_21, %c0_i32_24] : memref<2x2x8x128xf32, #tpu.memory_space<vmem>> -> memref<1x1x1x128xf32, #tpu.memory_space<vmem>>
      %33 = tpu.memref_squeeze %32 : memref<1x1x1x128xf32, #tpu.memory_space<vmem>> -> memref<1x128xf32, #tpu.memory_space<vmem>>
      %34 = tpu.memref_slice %arg6[%25] : memref<2x!tpu.dma_semaphore, #tpu.memory_space<semaphore_mem>> -> memref<1x!tpu.dma_semaphore, #tpu.memory_space<semaphore_mem>>
      %35 = tpu.memref_squeeze %34 : memref<1x!tpu.dma_semaphore, #tpu.memory_space<semaphore_mem>> -> memref<!tpu.dma_semaphore, #tpu.memory_space<semaphore_mem>>
      tpu.enqueue_dma source(%31 : memref<1x128xf32, #tpu.memory_space<any>>) target(%33 : memref<1x128xf32, #tpu.memory_space<vmem>>) target_semaphore(%35 : memref<!tpu.dma_semaphore, #tpu.memory_space<semaphore_mem>>)
      %c1_i32_25 = arith.constant 1 : i32
      %36 = arith.addi %27, %c1_i32_25 : i32
      %37 = arith.index_cast %36 : i32 to index
      %38 = memref.load %arg1[%37] : memref<48xi32, #tpu.memory_space<smem>>
      %c0_i32_26 = arith.constant 0 : i32
      %c0_i32_27 = arith.constant 0 : i32
      %39 = tpu.memref_slice %arg2[%38, %c0_i32_27] : memref<64x128xf32, #tpu.memory_space<any>> -> memref<1x128xf32, #tpu.memory_space<any>>
      %c0_i32_28 = arith.constant 0 : i32
      %40 = tpu.memref_slice %arg5[%25, %c0_i32_26, %c1_i32_25, %c0_i32_28] : memref<2x2x8x128xf32, #tpu.memory_space<vmem>> -> memref<1x1x1x128xf32, #tpu.memory_space<vmem>>
      %41 = tpu.memref_squeeze %40 : memref<1x1x1x128xf32, #tpu.memory_space<vmem>> -> memref<1x128xf32, #tpu.memory_space<vmem>>
      %42 = tpu.memref_slice %arg6[%25] : memref<2x!tpu.dma_semaphore, #tpu.memory_space<semaphore_mem>> -> memref<1x!tpu.dma_semaphore, #tpu.memory_space<semaphore_mem>>
      %43 = tpu.memref_squeeze %42 : memref<1x!tpu.dma_semaphore, #tpu.memory_space<semaphore_mem>> -> memref<!tpu.dma_semaphore, #tpu.memory_space<semaphore_mem>>
      tpu.enqueue_dma source(%39 : memref<1x128xf32, #tpu.memory_space<any>>) target(%41 : memref<1x128xf32, #tpu.memory_space<vmem>>) target_semaphore(%43 : memref<!tpu.dma_semaphore, #tpu.memory_space<semaphore_mem>>)
      %c2_i32 = arith.constant 2 : i32
      %44 = arith.addi %27, %c2_i32 : i32
      %45 = arith.index_cast %44 : i32 to index
      %46 = memref.load %arg1[%45] : memref<48xi32, #tpu.memory_space<smem>>
      %c0_i32_29 = arith.constant 0 : i32
      %c0_i32_30 = arith.constant 0 : i32
      %47 = tpu.memref_slice %arg2[%46, %c0_i32_30] : memref<64x128xf32, #tpu.memory_space<any>> -> memref<1x128xf32, #tpu.memory_space<any>>
      %c0_i32_31 = arith.constant 0 : i32
      %48 = tpu.memref_slice %arg5[%25, %c0_i32_29, %c2_i32, %c0_i32_31] : memref<2x2x8x128xf32, #tpu.memory_space<vmem>> -> memref<1x1x1x128xf32, #tpu.memory_space<vmem>>
      %49 = tpu.memref_squeeze %48 : memref<1x1x1x128xf32, #tpu.memory_space<vmem>> -> memref<1x128xf32, #tpu.memory_space<vmem>>
      %50 = tpu.memref_slice %arg6[%25] : memref<2x!tpu.dma_semaphore, #tpu.memory_space<semaphore_mem>> -> memref<1x!tpu.dma_semaphore, #tpu.memory_space<semaphore_mem>>
      %51 = tpu.memref_squeeze %50 : memref<1x!tpu.dma_semaphore, #tpu.memory_space<semaphore_mem>> -> memref<!tpu.dma_semaphore, #tpu.memory_space<semaphore_mem>>
      tpu.enqueue_dma source(%47 : memref<1x128xf32, #tpu.memory_space<any>>) target(%49 : memref<1x128xf32, #tpu.memory_space<vmem>>) target_semaphore(%51 : memref<!tpu.dma_semaphore, #tpu.memory_space<semaphore_mem>>)
      %c3_i32_32 = arith.constant 3 : i32
      %52 = arith.addi %27, %c3_i32_32 : i32
      %53 = arith.index_cast %52 : i32 to index
      %54 = memref.load %arg1[%53] : memref<48xi32, #tpu.memory_space<smem>>
      %c0_i32_33 = arith.constant 0 : i32
      %c0_i32_34 = arith.constant 0 : i32
      %55 = tpu.memref_slice %arg2[%54, %c0_i32_34] : memref<64x128xf32, #tpu.memory_space<any>> -> memref<1x128xf32, #tpu.memory_space<any>>
      %c0_i32_35 = arith.constant 0 : i32
      %56 = tpu.memref_slice %arg5[%25, %c0_i32_33, %c3_i32_32, %c0_i32_35] : memref<2x2x8x128xf32, #tpu.memory_space<vmem>> -> memref<1x1x1x128xf32, #tpu.memory_space<vmem>>
      %57 = tpu.memref_squeeze %56 : memref<1x1x1x128xf32, #tpu.memory_space<vmem>> -> memref<1x128xf32, #tpu.memory_space<vmem>>
      %58 = tpu.memref_slice %arg6[%25] : memref<2x!tpu.dma_semaphore, #tpu.memory_space<semaphore_mem>> -> memref<1x!tpu.dma_semaphore, #tpu.memory_space<semaphore_mem>>
      %59 = tpu.memref_squeeze %58 : memref<1x!tpu.dma_semaphore, #tpu.memory_space<semaphore_mem>> -> memref<!tpu.dma_semaphore, #tpu.memory_space<semaphore_mem>>
      tpu.enqueue_dma source(%55 : memref<1x128xf32, #tpu.memory_space<any>>) target(%57 : memref<1x128xf32, #tpu.memory_space<vmem>>) target_semaphore(%59 : memref<!tpu.dma_semaphore, #tpu.memory_space<semaphore_mem>>)
      %c4_i32 = arith.constant 4 : i32
      %60 = arith.addi %27, %c4_i32 : i32
      %61 = arith.index_cast %60 : i32 to index
      %62 = memref.load %arg1[%61] : memref<48xi32, #tpu.memory_space<smem>>
      %c0_i32_36 = arith.constant 0 : i32
      %c0_i32_37 = arith.constant 0 : i32
      %63 = tpu.memref_slice %arg2[%62, %c0_i32_37] : memref<64x128xf32, #tpu.memory_space<any>> -> memref<1x128xf32, #tpu.memory_space<any>>
      %c0_i32_38 = arith.constant 0 : i32
      %64 = tpu.memref_slice %arg5[%25, %c0_i32_36, %c4_i32, %c0_i32_38] : memref<2x2x8x128xf32, #tpu.memory_space<vmem>> -> memref<1x1x1x128xf32, #tpu.memory_space<vmem>>
      %65 = tpu.memref_squeeze %64 : memref<1x1x1x128xf32, #tpu.memory_space<vmem>> -> memref<1x128xf32, #tpu.memory_space<vmem>>
      %66 = tpu.memref_slice %arg6[%25] : memref<2x!tpu.dma_semaphore, #tpu.memory_space<semaphore_mem>> -> memref<1x!tpu.dma_semaphore, #tpu.memory_space<semaphore_mem>>
      %67 = tpu.memref_squeeze %66 : memref<1x!tpu.dma_semaphore, #tpu.memory_space<semaphore_mem>> -> memref<!tpu.dma_semaphore, #tpu.memory_space<semaphore_mem>>
      tpu.enqueue_dma source(%63 : memref<1x128xf32, #tpu.memory_space<any>>) target(%65 : memref<1x128xf32, #tpu.memory_space<vmem>>) target_semaphore(%67 : memref<!tpu.dma_semaphore, #tpu.memory_space<semaphore_mem>>)
      %c5_i32 = arith.constant 5 : i32
      %68 = arith.addi %27, %c5_i32 : i32
      %69 = arith.index_cast %68 : i32 to index
      %70 = memref.load %arg1[%69] : memref<48xi32, #tpu.memory_space<smem>>
      %c0_i32_39 = arith.constant 0 : i32
      %c0_i32_40 = arith.constant 0 : i32
      %71 = tpu.memref_slice %arg2[%70, %c0_i32_40] : memref<64x128xf32, #tpu.memory_space<any>> -> memref<1x128xf32, #tpu.memory_space<any>>
      %c0_i32_41 = arith.constant 0 : i32
      %72 = tpu.memref_slice %arg5[%25, %c0_i32_39, %c5_i32, %c0_i32_41] : memref<2x2x8x128xf32, #tpu.memory_space<vmem>> -> memref<1x1x1x128xf32, #tpu.memory_space<vmem>>
      %73 = tpu.memref_squeeze %72 : memref<1x1x1x128xf32, #tpu.memory_space<vmem>> -> memref<1x128xf32, #tpu.memory_space<vmem>>
      %74 = tpu.memref_slice %arg6[%25] : memref<2x!tpu.dma_semaphore, #tpu.memory_space<semaphore_mem>> -> memref<1x!tpu.dma_semaphore, #tpu.memory_space<semaphore_mem>>
      %75 = tpu.memref_squeeze %74 : memref<1x!tpu.dma_semaphore, #tpu.memory_space<semaphore_mem>> -> memref<!tpu.dma_semaphore, #tpu.memory_space<semaphore_mem>>
      tpu.enqueue_dma source(%71 : memref<1x128xf32, #tpu.memory_space<any>>) target(%73 : memref<1x128xf32, #tpu.memory_space<vmem>>) target_semaphore(%75 : memref<!tpu.dma_semaphore, #tpu.memory_space<semaphore_mem>>)
      %c6_i32 = arith.constant 6 : i32
      %76 = arith.addi %27, %c6_i32 : i32
      %77 = arith.index_cast %76 : i32 to index
      %78 = memref.load %arg1[%77] : memref<48xi32, #tpu.memory_space<smem>>
      %c0_i32_42 = arith.constant 0 : i32
      %c0_i32_43 = arith.constant 0 : i32
      %79 = tpu.memref_slice %arg2[%78, %c0_i32_43] : memref<64x128xf32, #tpu.memory_space<any>> -> memref<1x128xf32, #tpu.memory_space<any>>
      %c0_i32_44 = arith.constant 0 : i32
      %80 = tpu.memref_slice %arg5[%25, %c0_i32_42, %c6_i32, %c0_i32_44] : memref<2x2x8x128xf32, #tpu.memory_space<vmem>> -> memref<1x1x1x128xf32, #tpu.memory_space<vmem>>
      %81 = tpu.memref_squeeze %80 : memref<1x1x1x128xf32, #tpu.memory_space<vmem>> -> memref<1x128xf32, #tpu.memory_space<vmem>>
      %82 = tpu.memref_slice %arg6[%25] : memref<2x!tpu.dma_semaphore, #tpu.memory_space<semaphore_mem>> -> memref<1x!tpu.dma_semaphore, #tpu.memory_space<semaphore_mem>>
      %83 = tpu.memref_squeeze %82 : memref<1x!tpu.dma_semaphore, #tpu.memory_space<semaphore_mem>> -> memref<!tpu.dma_semaphore, #tpu.memory_space<semaphore_mem>>
      tpu.enqueue_dma source(%79 : memref<1x128xf32, #tpu.memory_space<any>>) target(%81 : memref<1x128xf32, #tpu.memory_space<vmem>>) target_semaphore(%83 : memref<!tpu.dma_semaphore, #tpu.memory_space<semaphore_mem>>)
      %c7_i32 = arith.constant 7 : i32
      %84 = arith.addi %27, %c7_i32 : i32
      %85 = arith.index_cast %84 : i32 to index
      %86 = memref.load %arg1[%85] : memref<48xi32, #tpu.memory_space<smem>>
      %c0_i32_45 = arith.constant 0 : i32
      %c0_i32_46 = arith.constant 0 : i32
      %87 = tpu.memref_slice %arg2[%86, %c0_i32_46] : memref<64x128xf32, #tpu.memory_space<any>> -> memref<1x128xf32, #tpu.memory_space<any>>
      %c0_i32_47 = arith.constant 0 : i32
      %88 = tpu.memref_slice %arg5[%25, %c0_i32_45, %c7_i32, %c0_i32_47] : memref<2x2x8x128xf32, #tpu.memory_space<vmem>> -> memref<1x1x1x128xf32, #tpu.memory_space<vmem>>
      %89 = tpu.memref_squeeze %88 : memref<1x1x1x128xf32, #tpu.memory_space<vmem>> -> memref<1x128xf32, #tpu.memory_space<vmem>>
      %90 = tpu.memref_slice %arg6[%25] : memref<2x!tpu.dma_semaphore, #tpu.memory_space<semaphore_mem>> -> memref<1x!tpu.dma_semaphore, #tpu.memory_space<semaphore_mem>>
      %91 = tpu.memref_squeeze %90 : memref<1x!tpu.dma_semaphore, #tpu.memory_space<semaphore_mem>> -> memref<!tpu.dma_semaphore, #tpu.memory_space<semaphore_mem>>
      tpu.enqueue_dma source(%87 : memref<1x128xf32, #tpu.memory_space<any>>) target(%89 : memref<1x128xf32, #tpu.memory_space<vmem>>) target_semaphore(%91 : memref<!tpu.dma_semaphore, #tpu.memory_space<semaphore_mem>>)
      %c8_i32 = arith.constant 8 : i32
      %c8_i32_48 = arith.constant 8 : i32
      %92 = arith.addi %26, %c8_i32_48 : i32
      %c0_i32_49 = arith.constant 0 : i32
      %93 = arith.addi %92, %c0_i32_49 : i32
      %94 = arith.index_cast %93 : i32 to index
      %95 = memref.load %arg1[%94] : memref<48xi32, #tpu.memory_space<smem>>
      %c1_i32_50 = arith.constant 1 : i32
      %c0_i32_51 = arith.constant 0 : i32
      %96 = tpu.memref_slice %arg2[%95, %c0_i32_51] : memref<64x128xf32, #tpu.memory_space<any>> -> memref<1x128xf32, #tpu.memory_space<any>>
      %c0_i32_52 = arith.constant 0 : i32
      %97 = tpu.memref_slice %arg5[%25, %c1_i32_50, %c0_i32_49, %c0_i32_52] : memref<2x2x8x128xf32, #tpu.memory_space<vmem>> -> memref<1x1x1x128xf32, #tpu.memory_space<vmem>>
      %98 = tpu.memref_squeeze %97 : memref<1x1x1x128xf32, #tpu.memory_space<vmem>> -> memref<1x128xf32, #tpu.memory_space<vmem>>
      %99 = tpu.memref_slice %arg6[%25] : memref<2x!tpu.dma_semaphore, #tpu.memory_space<semaphore_mem>> -> memref<1x!tpu.dma_semaphore, #tpu.memory_space<semaphore_mem>>
      %100 = tpu.memref_squeeze %99 : memref<1x!tpu.dma_semaphore, #tpu.memory_space<semaphore_mem>> -> memref<!tpu.dma_semaphore, #tpu.memory_space<semaphore_mem>>
      tpu.enqueue_dma source(%96 : memref<1x128xf32, #tpu.memory_space<any>>) target(%98 : memref<1x128xf32, #tpu.memory_space<vmem>>) target_semaphore(%100 : memref<!tpu.dma_semaphore, #tpu.memory_space<semaphore_mem>>)
      %c1_i32_53 = arith.constant 1 : i32
      %101 = arith.addi %92, %c1_i32_53 : i32
      %102 = arith.index_cast %101 : i32 to index
      %103 = memref.load %arg1[%102] : memref<48xi32, #tpu.memory_space<smem>>
      %c1_i32_54 = arith.constant 1 : i32
      %c0_i32_55 = arith.constant 0 : i32
      %104 = tpu.memref_slice %arg2[%103, %c0_i32_55] : memref<64x128xf32, #tpu.memory_space<any>> -> memref<1x128xf32, #tpu.memory_space<any>>
      %c0_i32_56 = arith.constant 0 : i32
      %105 = tpu.memref_slice %arg5[%25, %c1_i32_54, %c1_i32_53, %c0_i32_56] : memref<2x2x8x128xf32, #tpu.memory_space<vmem>> -> memref<1x1x1x128xf32, #tpu.memory_space<vmem>>
      %106 = tpu.memref_squeeze %105 : memref<1x1x1x128xf32, #tpu.memory_space<vmem>> -> memref<1x128xf32, #tpu.memory_space<vmem>>
      %107 = tpu.memref_slice %arg6[%25] : memref<2x!tpu.dma_semaphore, #tpu.memory_space<semaphore_mem>> -> memref<1x!tpu.dma_semaphore, #tpu.memory_space<semaphore_mem>>
      %108 = tpu.memref_squeeze %107 : memref<1x!tpu.dma_semaphore, #tpu.memory_space<semaphore_mem>> -> memref<!tpu.dma_semaphore, #tpu.memory_space<semaphore_mem>>
      tpu.enqueue_dma source(%104 : memref<1x128xf32, #tpu.memory_space<any>>) target(%106 : memref<1x128xf32, #tpu.memory_space<vmem>>) target_semaphore(%108 : memref<!tpu.dma_semaphore, #tpu.memory_space<semaphore_mem>>)
      %c2_i32_57 = arith.constant 2 : i32
      %109 = arith.addi %92, %c2_i32_57 : i32
      %110 = arith.index_cast %109 : i32 to index
      %111 = memref.load %arg1[%110] : memref<48xi32, #tpu.memory_space<smem>>
      %c1_i32_58 = arith.constant 1 : i32
      %c0_i32_59 = arith.constant 0 : i32
      %112 = tpu.memref_slice %arg2[%111, %c0_i32_59] : memref<64x128xf32, #tpu.memory_space<any>> -> memref<1x128xf32, #tpu.memory_space<any>>
      %c0_i32_60 = arith.constant 0 : i32
      %113 = tpu.memref_slice %arg5[%25, %c1_i32_58, %c2_i32_57, %c0_i32_60] : memref<2x2x8x128xf32, #tpu.memory_space<vmem>> -> memref<1x1x1x128xf32, #tpu.memory_space<vmem>>
      %114 = tpu.memref_squeeze %113 : memref<1x1x1x128xf32, #tpu.memory_space<vmem>> -> memref<1x128xf32, #tpu.memory_space<vmem>>
      %115 = tpu.memref_slice %arg6[%25] : memref<2x!tpu.dma_semaphore, #tpu.memory_space<semaphore_mem>> -> memref<1x!tpu.dma_semaphore, #tpu.memory_space<semaphore_mem>>
      %116 = tpu.memref_squeeze %115 : memref<1x!tpu.dma_semaphore, #tpu.memory_space<semaphore_mem>> -> memref<!tpu.dma_semaphore, #tpu.memory_space<semaphore_mem>>
      tpu.enqueue_dma source(%112 : memref<1x128xf32, #tpu.memory_space<any>>) target(%114 : memref<1x128xf32, #tpu.memory_space<vmem>>) target_semaphore(%116 : memref<!tpu.dma_semaphore, #tpu.memory_space<semaphore_mem>>)
      %c3_i32_61 = arith.constant 3 : i32
      %117 = arith.addi %92, %c3_i32_61 : i32
      %118 = arith.index_cast %117 : i32 to index
      %119 = memref.load %arg1[%118] : memref<48xi32, #tpu.memory_space<smem>>
      %c1_i32_62 = arith.constant 1 : i32
      %c0_i32_63 = arith.constant 0 : i32
      %120 = tpu.memref_slice %arg2[%119, %c0_i32_63] : memref<64x128xf32, #tpu.memory_space<any>> -> memref<1x128xf32, #tpu.memory_space<any>>
      %c0_i32_64 = arith.constant 0 : i32
      %121 = tpu.memref_slice %arg5[%25, %c1_i32_62, %c3_i32_61, %c0_i32_64] : memref<2x2x8x128xf32, #tpu.memory_space<vmem>> -> memref<1x1x1x128xf32, #tpu.memory_space<vmem>>
      %122 = tpu.memref_squeeze %121 : memref<1x1x1x128xf32, #tpu.memory_space<vmem>> -> memref<1x128xf32, #tpu.memory_space<vmem>>
      %123 = tpu.memref_slice %arg6[%25] : memref<2x!tpu.dma_semaphore, #tpu.memory_space<semaphore_mem>> -> memref<1x!tpu.dma_semaphore, #tpu.memory_space<semaphore_mem>>
      %124 = tpu.memref_squeeze %123 : memref<1x!tpu.dma_semaphore, #tpu.memory_space<semaphore_mem>> -> memref<!tpu.dma_semaphore, #tpu.memory_space<semaphore_mem>>
      tpu.enqueue_dma source(%120 : memref<1x128xf32, #tpu.memory_space<any>>) target(%122 : memref<1x128xf32, #tpu.memory_space<vmem>>) target_semaphore(%124 : memref<!tpu.dma_semaphore, #tpu.memory_space<semaphore_mem>>)
      %c4_i32_65 = arith.constant 4 : i32
      %125 = arith.addi %92, %c4_i32_65 : i32
      %126 = arith.index_cast %125 : i32 to index
      %127 = memref.load %arg1[%126] : memref<48xi32, #tpu.memory_space<smem>>
      %c1_i32_66 = arith.constant 1 : i32
      %c0_i32_67 = arith.constant 0 : i32
      %128 = tpu.memref_slice %arg2[%127, %c0_i32_67] : memref<64x128xf32, #tpu.memory_space<any>> -> memref<1x128xf32, #tpu.memory_space<any>>
      %c0_i32_68 = arith.constant 0 : i32
      %129 = tpu.memref_slice %arg5[%25, %c1_i32_66, %c4_i32_65, %c0_i32_68] : memref<2x2x8x128xf32, #tpu.memory_space<vmem>> -> memref<1x1x1x128xf32, #tpu.memory_space<vmem>>
      %130 = tpu.memref_squeeze %129 : memref<1x1x1x128xf32, #tpu.memory_space<vmem>> -> memref<1x128xf32, #tpu.memory_space<vmem>>
      %131 = tpu.memref_slice %arg6[%25] : memref<2x!tpu.dma_semaphore, #tpu.memory_space<semaphore_mem>> -> memref<1x!tpu.dma_semaphore, #tpu.memory_space<semaphore_mem>>
      %132 = tpu.memref_squeeze %131 : memref<1x!tpu.dma_semaphore, #tpu.memory_space<semaphore_mem>> -> memref<!tpu.dma_semaphore, #tpu.memory_space<semaphore_mem>>
      tpu.enqueue_dma source(%128 : memref<1x128xf32, #tpu.memory_space<any>>) target(%130 : memref<1x128xf32, #tpu.memory_space<vmem>>) target_semaphore(%132 : memref<!tpu.dma_semaphore, #tpu.memory_space<semaphore_mem>>)
      %c5_i32_69 = arith.constant 5 : i32
      %133 = arith.addi %92, %c5_i32_69 : i32
      %134 = arith.index_cast %133 : i32 to index
      %135 = memref.load %arg1[%134] : memref<48xi32, #tpu.memory_space<smem>>
      %c1_i32_70 = arith.constant 1 : i32
      %c0_i32_71 = arith.constant 0 : i32
      %136 = tpu.memref_slice %arg2[%135, %c0_i32_71] : memref<64x128xf32, #tpu.memory_space<any>> -> memref<1x128xf32, #tpu.memory_space<any>>
      %c0_i32_72 = arith.constant 0 : i32
      %137 = tpu.memref_slice %arg5[%25, %c1_i32_70, %c5_i32_69, %c0_i32_72] : memref<2x2x8x128xf32, #tpu.memory_space<vmem>> -> memref<1x1x1x128xf32, #tpu.memory_space<vmem>>
      %138 = tpu.memref_squeeze %137 : memref<1x1x1x128xf32, #tpu.memory_space<vmem>> -> memref<1x128xf32, #tpu.memory_space<vmem>>
      %139 = tpu.memref_slice %arg6[%25] : memref<2x!tpu.dma_semaphore, #tpu.memory_space<semaphore_mem>> -> memref<1x!tpu.dma_semaphore, #tpu.memory_space<semaphore_mem>>
      %140 = tpu.memref_squeeze %139 : memref<1x!tpu.dma_semaphore, #tpu.memory_space<semaphore_mem>> -> memref<!tpu.dma_semaphore, #tpu.memory_space<semaphore_mem>>
      tpu.enqueue_dma source(%136 : memref<1x128xf32, #tpu.memory_space<any>>) target(%138 : memref<1x128xf32, #tpu.memory_space<vmem>>) target_semaphore(%140 : memref<!tpu.dma_semaphore, #tpu.memory_space<semaphore_mem>>)
      %c6_i32_73 = arith.constant 6 : i32
      %141 = arith.addi %92, %c6_i32_73 : i32
      %142 = arith.index_cast %141 : i32 to index
      %143 = memref.load %arg1[%142] : memref<48xi32, #tpu.memory_space<smem>>
      %c1_i32_74 = arith.constant 1 : i32
      %c0_i32_75 = arith.constant 0 : i32
      %144 = tpu.memref_slice %arg2[%143, %c0_i32_75] : memref<64x128xf32, #tpu.memory_space<any>> -> memref<1x128xf32, #tpu.memory_space<any>>
      %c0_i32_76 = arith.constant 0 : i32
      %145 = tpu.memref_slice %arg5[%25, %c1_i32_74, %c6_i32_73, %c0_i32_76] : memref<2x2x8x128xf32, #tpu.memory_space<vmem>> -> memref<1x1x1x128xf32, #tpu.memory_space<vmem>>
      %146 = tpu.memref_squeeze %145 : memref<1x1x1x128xf32, #tpu.memory_space<vmem>> -> memref<1x128xf32, #tpu.memory_space<vmem>>
      %147 = tpu.memref_slice %arg6[%25] : memref<2x!tpu.dma_semaphore, #tpu.memory_space<semaphore_mem>> -> memref<1x!tpu.dma_semaphore, #tpu.memory_space<semaphore_mem>>
      %148 = tpu.memref_squeeze %147 : memref<1x!tpu.dma_semaphore, #tpu.memory_space<semaphore_mem>> -> memref<!tpu.dma_semaphore, #tpu.memory_space<semaphore_mem>>
      tpu.enqueue_dma source(%144 : memref<1x128xf32, #tpu.memory_space<any>>) target(%146 : memref<1x128xf32, #tpu.memory_space<vmem>>) target_semaphore(%148 : memref<!tpu.dma_semaphore, #tpu.memory_space<semaphore_mem>>)
      %c7_i32_77 = arith.constant 7 : i32
      %149 = arith.addi %92, %c7_i32_77 : i32
      %150 = arith.index_cast %149 : i32 to index
      %151 = memref.load %arg1[%150] : memref<48xi32, #tpu.memory_space<smem>>
      %c1_i32_78 = arith.constant 1 : i32
      %c0_i32_79 = arith.constant 0 : i32
      %152 = tpu.memref_slice %arg2[%151, %c0_i32_79] : memref<64x128xf32, #tpu.memory_space<any>> -> memref<1x128xf32, #tpu.memory_space<any>>
      %c0_i32_80 = arith.constant 0 : i32
      %153 = tpu.memref_slice %arg5[%25, %c1_i32_78, %c7_i32_77, %c0_i32_80] : memref<2x2x8x128xf32, #tpu.memory_space<vmem>> -> memref<1x1x1x128xf32, #tpu.memory_space<vmem>>
      %154 = tpu.memref_squeeze %153 : memref<1x1x1x128xf32, #tpu.memory_space<vmem>> -> memref<1x128xf32, #tpu.memory_space<vmem>>
      %155 = tpu.memref_slice %arg6[%25] : memref<2x!tpu.dma_semaphore, #tpu.memory_space<semaphore_mem>> -> memref<1x!tpu.dma_semaphore, #tpu.memory_space<semaphore_mem>>
      %156 = tpu.memref_squeeze %155 : memref<1x!tpu.dma_semaphore, #tpu.memory_space<semaphore_mem>> -> memref<!tpu.dma_semaphore, #tpu.memory_space<semaphore_mem>>
      tpu.enqueue_dma source(%152 : memref<1x128xf32, #tpu.memory_space<any>>) target(%154 : memref<1x128xf32, #tpu.memory_space<vmem>>) target_semaphore(%156 : memref<!tpu.dma_semaphore, #tpu.memory_space<semaphore_mem>>)
      %c8_i32_81 = arith.constant 8 : i32
    } else {
    }
    %c1_i32_2 = arith.constant 1 : i32
    %7 = arith.andi %arg0, %c1_i32_2 : i32
    %c1_i32_3 = arith.constant 1 : i32
    %8 = arith.subi %c1_i32_3, %7 : i32
    %c0_i32_4 = arith.constant 0 : i32
    %c0_i32_5 = arith.constant 0 : i32
    %c0_i32_6 = arith.constant 0 : i32
    %9 = tpu.memref_slice %arg5[%8, %c0_i32_4, %c0_i32_5, %c0_i32_6] : memref<2x2x8x128xf32, #tpu.memory_space<vmem>> -> memref<1x2x8x128xf32, #tpu.memory_space<vmem>>
    %10 = tpu.memref_squeeze %9 : memref<1x2x8x128xf32, #tpu.memory_space<vmem>> -> memref<2x8x128xf32, #tpu.memory_space<vmem>>
    %c0_i32_7 = arith.constant 0 : i32
    %c0_i32_8 = arith.constant 0 : i32
    %c0_i32_9 = arith.constant 0 : i32
    %11 = tpu.memref_slice %arg5[%7, %c0_i32_7, %c0_i32_8, %c0_i32_9] : memref<2x2x8x128xf32, #tpu.memory_space<vmem>> -> memref<1x2x8x128xf32, #tpu.memory_space<vmem>>
    %12 = tpu.memref_squeeze %11 : memref<1x2x8x128xf32, #tpu.memory_space<vmem>> -> memref<2x8x128xf32, #tpu.memory_space<vmem>>
    %13 = tpu.memref_slice %arg6[%7] : memref<2x!tpu.dma_semaphore, #tpu.memory_space<semaphore_mem>> -> memref<1x!tpu.dma_semaphore, #tpu.memory_space<semaphore_mem>>
    %14 = tpu.memref_squeeze %13 : memref<1x!tpu.dma_semaphore, #tpu.memory_space<semaphore_mem>> -> memref<!tpu.dma_semaphore, #tpu.memory_space<semaphore_mem>>
    tpu.wait_dma2 semaphore(%14 : memref<!tpu.dma_semaphore, #tpu.memory_space<semaphore_mem>>) src(%10 : memref<2x8x128xf32, #tpu.memory_space<vmem>>) dst(%12 : memref<2x8x128xf32, #tpu.memory_space<vmem>>)
    %15 = arith.index_cast %7 : i32 to index
    %c0 = arith.constant 0 : index
    %c0_10 = arith.constant 0 : index
    %c0_11 = arith.constant 0 : index
    %16 = vector.load %arg5[%15, %c0, %c0_10, %c0_11] : memref<2x2x8x128xf32, #tpu.memory_space<vmem>>, vector<1x2x8x128xf32>
    %17 = vector.shape_cast %16 : vector<1x2x8x128xf32> to vector<2x8x128xf32>
    %c0_12 = arith.constant 0 : index
    %c0_13 = arith.constant 0 : index
    %18 = vector.load %arg3[%c0_12, %c0_13] : memref<8x128xf32, #tpu.memory_space<vmem>>, vector<8x128xf32>
    %19 = vector.shape_cast %18 : vector<8x128xf32> to vector<1x8x128xf32>
    %20 = vector.broadcast %19 : vector<1x8x128xf32> to vector<2x8x128xf32>
    %21 = arith.addf %17, %20 : vector<2x8x128xf32>
    %c0_14 = arith.constant 0 : index
    %c0_15 = arith.constant 0 : index
    %c0_16 = arith.constant 0 : index
    %22 = vector.load %arg4[%c0_14, %c0_15, %c0_16] : memref<2x8x128xf32, #tpu.memory_space<vmem>>, vector<2x8x128xf32>
    tpu.vector_store %arg4[%c0_14, %c0_15, %c0_16], %21 {strides = array<i32>} : memref<2x8x128xf32, #tpu.memory_space<vmem>>, vector<2x8x128xf32>,
    return
  }
  func.func @transform_1(%arg0: i32, %arg1: memref<48xi32, #tpu.memory_space<smem>>) -> (i32, i32) {
    %c0_i32 = arith.constant 0 : i32
    %c0_i32_0 = arith.constant 0 : i32
    %c0_i32_1 = arith.constant 0 : i32
    return %c0_i32, %c0_i32_0 : i32, i32
  }
  func.func @transform_2(%arg0: i32, %arg1: memref<48xi32, #tpu.memory_space<smem>>) -> (i32, i32, i32) {
    %c0_i32 = arith.constant 0 : i32
    %c0_i32_0 = arith.constant 0 : i32
    %c0_i32_1 = arith.constant 0 : i32
    return %arg0, %c0_i32, %c0_i32_0 : i32, i32, i32
  }
}

</mosaic_0001>

<bundles_post_ra>
// kernel: tpu_custom_call.1
= control target key start
LH: loop header
LB: loop body
LE: loop exit
PB: predicated region body
PF: predicated region fallthrough
CT: control target
= control target key end

     0   :  { %s1948_s15 = smov [#allocation5]   ;;  %s2552_s0 = inlined_call_operand.hbm [shape: s32[48], index: 0, kind: input, shape index: {}]   ;;  %s2553_s1 = inlined_call_operand.hbm [shape: f32[64,128], index: 1, kind: input, shape index: {}]   ;;  %s2554_s2 = inlined_call_operand.hbm [shape: f32[8,128], index: 2, kind: input, shape index: {}]   ;;  %s2555_s3 = inlined_call_operand.hbm [shape: f32[6,8,128], index: 3, kind: output, shape index: {}]  }
   0x1   :  { %2562 = sst [smem:[#allocation85_spill]] %s2554_s2  ;;  %s9_s14 = sshll.u32 %s2552_s0, 4  ;;  %s10_s14 = int_to_ptr.hbm [resolvable:$true] %s9_s14 }
   0x2   :  { %12 = dma.hbm_to_smem %s10_s14, 16, %s1948_s15, [#allocation4] }
   0x3   :  { %1920 = dma.done.wait [#allocation4], 16 }
   0x4   :  { %1921 = vsyncadd [#allocation4], 4294967280 }
   0x5   :  { %15 = sfence }
   0x6   :  { %16 = vsyncpa [#allocation7], 0 }
   0x7   :  { %17 = vsyncpa [#allocation8], 0 }
   0x8   :  { %19 = vsyncpa [#allocation8 + $0x1], 0  ;;  %s1991_s16 = smov 0   ;;  %s1993_s17 = smov 0  }
   0x9   :  { %s1995_s18 = smov 0   ;;  %s1997_s19 = smov 0  }
   0xa LB: > { %2563 = sst [smem:[#allocation80_spill]] %s1942_s18  ;;  %s2012_s0 = sadd.s32 4294967295, %s1946_s19   ;;  %s1946_s19 = sphi %s1997_s19, %s2585_s19   ;;  %s1942_s18 = sphi %s1995_s18, %s2582_s18   ;;  %s1938_s17 = sphi %s1993_s17, %s2584_s17   ;;  %s1934_s16 = sphi %s1991_s16, %s2583_s16  }
   0xb   : > { %s864_s20 = sadd.s32 4294967294, %s1946_s19   ;;  %s2016_s21 = sadd.s32 1, %s1946_s19  }
   0xc   : > { %s53_s22 = sadd.s32 1, %s1942_s18  ;;  %s50_s23 = ssub.s32 %s1946_s19, %s2016_s21 }
   0xd   : > { %p63_p0 = scmp.ne.s32.totalorder %s1942_s18, %s1938_s17  ;;  %p51_p1 = scmp.eq.s32.totalorder %s50_s23, 0 }
   0xe   : > { %p64_p2 = scmp.eq.s32.totalorder %s2012_s0, 2  ;;  %p69_p3 = scmp.ne.s32.totalorder %s1938_s17, %s1934_s16 }
   0xf   : > { %p70_p4 = scmp.eq.s32.totalorder %s864_s20, 2  ;;  %p865_p7 = scmp.ge.s32.totalorder %s1946_s19, 1 }
  0x10   : > { %s2027_s24 = scalar_select %p51_p1, %s1942_s18, %s53_s22  }
  0x11   : > { %p2029_p5 = por %p64_p2, %p63_p0  ;;  %p2033_p6 = por %p70_p4, %p69_p3 }
  0x12   : > { %2564 = sst [smem:[#allocation81_spill]] %s2027_s24  ;;  %p77_p8 = scmp.lt.s32.totalorder %s1946_s19, 4 }
  0x13   : > { %p946_p9 = scmp.eq.s32.totalorder %s2012_s0, 0  ;;  %s2567_s2 = sld [smem:[#allocation85_spill]] }
  0x14   : > { %p78_p10 = pnand %p865_p7, %p77_p8  ;;  %s1949_s30 = smov [#allocation6]  }
  0x15   : > { %s91_s4 = sshll.u32 %s1949_s30, 4  ;;  %s92_s4 = int_to_ptr.vmem [resolvable:$true] %s91_s4 }
  0x16   : > { %p938_p11 = pneg %p78_p10  ;;  %104 = sbr.rel (%p78_p10) target bundleno = 499 (0x1f3), region = 24 }
  0x18   : > { %p939_p12 = pnand %p946_p9, %p938_p11 }
  0x19   : > { %s89_s29 = sshll.u32 %s2567_s2, 4  ;;  %s90_s29 = int_to_ptr.hbm [resolvable:$true] %s89_s29 }
  0x1a   : > { %941 = dma.hbm_to_vmem [thread:$0]  (!%p939_p12), %s90_s29, 128, %s92_s4, [#allocation7]  }
  0x1b   : > { %1923 = dma.done.wait (%p946_p9), [#allocation7], 128  }
  0x1c   : > { %1925 = vsyncadd (%p946_p9), [#allocation7], 4294967168  ;;  %s2556_s5 = sand.u32 1, %s1938_s17   ;;  %s125_s7 = sld [smem:[#allocation5]] }
  0x1d   : > { %s2052_s6 = sshll.u32 %s2556_s5, 4  ;;  %s1950_s8 = smov [#allocation2]  }
  0x1e   : > { %s136_s9 = sshll.u32 %s1950_s8, 4  ;;  %s871_s10 = sld [smem:[#allocation5 + $0x1]]  ;;  %s137_s9 = int_to_ptr.vmem [resolvable:$true] %s136_s9 }
  0x1f   : > { %s872_s11 = sld [smem:[#allocation5 + $0x2]]  ;;  %s1951_s12 = smov [#allocation2 + $0x1]  }
  0x20   : > { %s2054_s13 = sshll.u32 %s1951_s12, 4  ;;  %s1952_s14 = smov [#allocation2 + $0x2]   ;;  %s153_s13 = int_to_ptr.vmem [resolvable:$true] %s2054_s13 }
  0x21   : > { %s2057_s15 = sshll.u32 %s1952_s14, 4  ;;  %s2063_s28 = sld [smem:[#allocation5 + $0x3]]  ;;  %s169_s15 = int_to_ptr.vmem [resolvable:$true] %s2057_s15 }
  0x22   : > { %s126_s23 = scalar_lea.hbm %s2553_s1, %s125_s7  ;;  %s2073_s7 = scalar_lea.hbm %s2553_s1, 64 }
  0x23   : > { %s134_s27 = sshll.u32 %s126_s23, 4  ;;  %s135_s27 = int_to_ptr.hbm [resolvable:$true] %s134_s27 }
  0x24   : > { %s141_s4 = scalar_lea.hbm %s2553_s1, %s871_s10  ;;  %s1044_s8 = sshra.s32 %s135_s27, 4  ;;  %s1045_s8 = int_to_ptr.hbm [resolvable:$true] %s1044_s8 }
  0x25   : > { %s1046_s12 = scalar_lea.hbm %s1045_s8, 1  ;;  %p1051_p2 = scmp.lt.s32.totalorder %s1045_s8, %s2553_s1 }
  0x26   : > { %p1047_p13 = scmp.ne.s32.totalorder %s1045_s8, %s1046_s12  ;;  %p1052_p3 = scmp.lt.s32.totalorder %s2073_s7, %s1046_s12 }
  0x28   : > { %p1048_p0 = pnand %p1047_p13, %p946_p9  ;;  %p1053_p4 = por %p1052_p3, %p1051_p2 }
  0x2a   : > { %p1049_p1 = pneg %p1048_p0 }
  0x2c   : > { %p1054_p7 = pnand %p1053_p4, %p1049_p1 }
  0x2e   : > { %1057 = shalt.err (!%p1054_p7)  }
  0x2f   : > { %920 = dma.hbm_to_vmem [thread:$0]  (%p946_p9), %s135_s27, 16, %s137_s9, [#allocation3] }
  0x30   : > { %s150_s10 = sshll.u32 %s141_s4, 4  ;;  %s157_s14 = scalar_lea.hbm %s2553_s1, %s872_s11  ;;  %s151_s10 = int_to_ptr.hbm [resolvable:$true] %s150_s10 }
  0x31   : > { %s166_s20 = sshll.u32 %s157_s14, 4  ;;  %s1072_s5 = sshra.s32 %s151_s10, 4  ;;  %s1073_s5 = int_to_ptr.hbm [resolvable:$true] %s1072_s5  ;;  %s167_s20 = int_to_ptr.hbm [resolvable:$true] %s166_s20 }
  0x32   : > { %s1074_s22 = scalar_lea.hbm %s1073_s5, 1  ;;  %p1079_p12 = scmp.lt.s32.totalorder %s1073_s5, %s2553_s1 }
  0x33   : > { %p1075_p8 = scmp.ne.s32.totalorder %s1073_s5, %s1074_s22  ;;  %p1080_p13 = scmp.lt.s32.totalorder %s2073_s7, %s1074_s22 }
  0x35   : > { %p1076_p10 = pnand %p1075_p8, %p946_p9  ;;  %p1081_p0 = por %p1080_p13, %p1079_p12 }
  0x37   : > { %p1077_p11 = pneg %p1076_p10 }
  0x39   : > { %p1082_p1 = pnand %p1081_p0, %p1077_p11 }
  0x3b   : > { %1085 = shalt.err (!%p1082_p1)  }
  0x3c   : > { %921 = dma.hbm_to_vmem [thread:$0]  (%p946_p9), %s151_s10, 16, %s153_s13, [#allocation3] }
  0x3d   : > { %s173_s27 = scalar_lea.hbm %s2553_s1, %s2063_s28  ;;  %s1100_s4 = sshra.s32 %s167_s20, 4  ;;  %s1101_s4 = int_to_ptr.hbm [resolvable:$true] %s1100_s4 }
  0x3e   : > { %s1102_s5 = scalar_lea.hbm %s1101_s4, 1  ;;  %p1107_p7 = scmp.lt.s32.totalorder %s1101_s4, %s2553_s1 }
  0x3f   : > { %p1103_p2 = scmp.ne.s32.totalorder %s1101_s4, %s1102_s5  ;;  %p1108_p8 = scmp.lt.s32.totalorder %s2073_s7, %s1102_s5 }
  0x41   : > { %p1104_p3 = pnand %p1103_p2, %p946_p9  ;;  %p1109_p10 = por %p1108_p8, %p1107_p7 }
  0x43   : > { %p1105_p4 = pneg %p1104_p3 }
  0x45   : > { %p1110_p11 = pnand %p1109_p10, %p1105_p4 }
  0x47   : > { %1113 = shalt.err (!%p1110_p11)  }
  0x48   : > { %922 = dma.hbm_to_vmem [thread:$0]  (%p946_p9), %s167_s20, 16, %s169_s15, [#allocation3] }
  0x49   : > { %s182_s13 = sshll.u32 %s173_s27, 4  ;;  %s1953_s28 = smov [#allocation2 + $0x3]   ;;  %s183_s13 = int_to_ptr.hbm [resolvable:$true] %s182_s13 }
  0x4a   : > { %s184_s10 = sshll.u32 %s1953_s28, 4  ;;  %s874_s30 = sld [smem:[#allocation5 + $0x4]]  ;;  %s185_s10 = int_to_ptr.vmem [resolvable:$true] %s184_s10 }
  0x4b   : > { %s1128_s14 = sshra.s32 %s183_s13, 4  ;;  %s1129_s14 = int_to_ptr.hbm [resolvable:$true] %s1128_s14 }
  0x4c   : > { %s1130_s22 = scalar_lea.hbm %s1129_s14, 1  ;;  %p1135_p1 = scmp.lt.s32.totalorder %s1129_s14, %s2553_s1 }
  0x4d   : > { %p1131_p12 = scmp.ne.s32.totalorder %s1129_s14, %s1130_s22  ;;  %p1136_p2 = scmp.lt.s32.totalorder %s2073_s7, %s1130_s22 }
  0x4f   : > { %p1132_p13 = pnand %p1131_p12, %p946_p9  ;;  %p1137_p3 = por %p1136_p2, %p1135_p1 }
  0x51   : > { %p1133_p0 = pneg %p1132_p13 }
  0x53   : > { %p1138_p4 = pnand %p1137_p3, %p1133_p0 }
  0x55   : > { %1141 = shalt.err (!%p1138_p4)  }
  0x56   : > { %923 = dma.hbm_to_vmem [thread:$0]  (%p946_p9), %s183_s13, 16, %s185_s10, [#allocation3] }
  0x57   : > { %s875_s15 = sld [smem:[#allocation5 + $0x5]]  ;;  %s1954_s20 = smov [#allocation2 + $0x4]  }
  0x58   : > { %s200_s9 = sshll.u32 %s1954_s20, 4  ;;  %s1955_s11 = smov [#allocation2 + $0x5]   ;;  %s201_s9 = int_to_ptr.vmem [resolvable:$true] %s200_s9 }
  0x59   : > { %s2116_s27 = sshll.u32 %s1955_s11, 4  ;;  %s2119_s4 = sld [smem:[#allocation5 + $0x6]] }
  0x5a   : > { %2568 = sst [smem:[#allocation82_spill]] %s2116_s27  ;;  %s189_s29 = scalar_lea.hbm %s2553_s1, %s874_s30 }
  0x5b   : > { %s198_s28 = sshll.u32 %s189_s29, 4  ;;  %s1956_s14 = smov [#allocation2 + $0x6]   ;;  %s199_s28 = int_to_ptr.hbm [resolvable:$true] %s198_s28 }
  0x5c   : > { %s2124_s13 = sshll.u32 %s1956_s14, 4  ;;  %s1156_s12 = sshra.s32 %s199_s28, 4  ;;  %s1157_s12 = int_to_ptr.hbm [resolvable:$true] %s1156_s12  ;;  %s233_s13 = int_to_ptr.vmem [resolvable:$true] %s2124_s13 }
  0x5d   : > { %s205_s8 = scalar_lea.hbm %s2553_s1, %s875_s15  ;;  %s1158_s20 = scalar_lea.hbm %s1157_s12, 1 }
  0x5e   : > { %p1159_p7 = scmp.ne.s32.totalorder %s1157_s12, %s1158_s20  ;;  %p1163_p11 = scmp.lt.s32.totalorder %s1157_s12, %s2553_s1 }
  0x5f   : > { %p1164_p12 = scmp.lt.s32.totalorder %s2073_s7, %s1158_s20 }
  0x60   : > { %p1160_p8 = pnand %p1159_p7, %p946_p9 }
  0x61   : > { %p1165_p13 = por %p1164_p12, %p1163_p11 }
  0x62   : > { %p1161_p10 = pneg %p1160_p8 }
  0x64   : > { %p1166_p0 = pnand %p1165_p13, %p1161_p10 }
  0x66   : > { %1169 = shalt.err (!%p1166_p0)  }
  0x67   : > { %924 = dma.hbm_to_vmem [thread:$0]  (%p946_p9), %s199_s28, 16, %s201_s9, [#allocation3] }
  0x68   : > { %s214_s30 = sshll.u32 %s205_s8, 4  ;;  %s221_s23 = scalar_lea.hbm %s2553_s1, %s2119_s4  ;;  %s215_s30 = int_to_ptr.hbm [resolvable:$true] %s214_s30 }
  0x69   : > { %s1184_s27 = sshra.s32 %s215_s30, 4  ;;  %s1185_s27 = int_to_ptr.hbm [resolvable:$true] %s1184_s27 }
  0x6a   : > { %s1186_s29 = scalar_lea.hbm %s1185_s27, 1  ;;  %p1191_p4 = scmp.lt.s32.totalorder %s1185_s27, %s2553_s1 }
  0x6b   : > { %p1187_p1 = scmp.ne.s32.totalorder %s1185_s27, %s1186_s29  ;;  %p1192_p7 = scmp.lt.s32.totalorder %s2073_s7, %s1186_s29 }
  0x6d   : > { %p1188_p2 = pnand %p1187_p1, %p946_p9  ;;  %p1193_p8 = por %p1192_p7, %p1191_p4 }
  0x6f   : > { %p1189_p3 = pneg %p1188_p2 }
  0x71   : > { %p1194_p10 = pnand %p1193_p8, %p1189_p3 }
  0x73   : > { %1197 = shalt.err (!%p1194_p10)  }
  0x74   : > { %s2569_s9 = sld [smem:[#allocation82_spill]]  ;;  %s230_s4 = sshll.u32 %s221_s23, 4  ;;  %s231_s4 = int_to_ptr.hbm [resolvable:$true] %s230_s4 }
  0x75   : > { %s877_s22 = sld [smem:[#allocation5 + $0x7]]  ;;  %s1212_s8 = sshra.s32 %s231_s4, 4  ;;  %s1213_s8 = int_to_ptr.hbm [resolvable:$true] %s1212_s8 }
  0x76   : > { %s1214_s12 = scalar_lea.hbm %s1213_s8, 1  ;;  %p1219_p0 = scmp.lt.s32.totalorder %s1213_s8, %s2553_s1 }
  0x77   : > { %p1215_p11 = scmp.ne.s32.totalorder %s1213_s8, %s1214_s12  ;;  %p1220_p1 = scmp.lt.s32.totalorder %s2073_s7, %s1214_s12 }
  0x79   : > { %p1216_p12 = pnand %p1215_p11, %p946_p9  ;;  %p1221_p2 = por %p1220_p1, %p1219_p0 }
  0x7a   : > { %s2570_s28 = int_to_ptr.vmem [resolvable:$true] %s2569_s9 }
  0x7b   : > { %925 = dma.hbm_to_vmem [thread:$0]  (%p946_p9), %s215_s30, 16, %s2570_s28, [#allocation3] }
  0x7c   : > { %p1217_p13 = pneg %p1216_p12 }
  0x7e   : > { %p1222_p3 = pnand %p1221_p2, %p1217_p13 }
  0x80   : > { %1225 = shalt.err (!%p1222_p3)  }
  0x81   : > { %926 = dma.hbm_to_vmem [thread:$0]  (%p946_p9), %s231_s4, 16, %s233_s13, [#allocation3] }
  0x82   : > { %s1957_s30 = smov [#allocation2 + $0x7]   ;;  %s878_s5 = sld [smem:[#allocation5 + $0x8]] }
  0x83   : > { %s248_s15 = sshll.u32 %s1957_s30, 4  ;;  %s1958_s23 = smov [#allocation2 + $0x8]   ;;  %s249_s15 = int_to_ptr.vmem [resolvable:$true] %s248_s15 }
  0x84   : > { %s2162_s27 = sshll.u32 %s1958_s23, 4  ;;  %s879_s29 = sld [smem:[#allocation5 + $0x9]]  ;;  %s265_s27 = int_to_ptr.vmem [resolvable:$true] %s2162_s27 }
  0x85   : > { %s237_s9 = scalar_lea.hbm %s2553_s1, %s877_s22  ;;  %s1959_s8 = smov [#allocation2 + $0x9]  }
  0x86   : > { %s246_s28 = sshll.u32 %s237_s9, 4  ;;  %s2168_s13 = sshll.u32 %s1959_s8, 4  ;;  %s247_s28 = int_to_ptr.hbm [resolvable:$true] %s246_s28  ;;  %s281_s13 = int_to_ptr.vmem [resolvable:$true] %s2168_s13 }
  0x87   : > { %s1240_s4 = sshra.s32 %s247_s28, 4  ;;  %s1241_s4 = int_to_ptr.hbm [resolvable:$true] %s1240_s4 }
  0x88   : > { %s1242_s12 = scalar_lea.hbm %s1241_s4, 1  ;;  %p1247_p10 = scmp.lt.s32.totalorder %s1241_s4, %s2553_s1 }
  0x89   : > { %p1243_p4 = scmp.ne.s32.totalorder %s1241_s4, %s1242_s12  ;;  %p1248_p11 = scmp.lt.s32.totalorder %s2073_s7, %s1242_s12 }
  0x8b   : > { %p1244_p7 = pnand %p1243_p4, %p946_p9  ;;  %p1249_p12 = por %p1248_p11, %p1247_p10 }
  0x8d   : > { %p1245_p8 = pneg %p1244_p7 }
  0x8f   : > { %p1250_p13 = pnand %p1249_p12, %p1245_p8 }
  0x91   : > { %1253 = shalt.err (!%p1250_p13)  }
  0x92   : > { %927 = dma.hbm_to_vmem [thread:$0]  (%p946_p9), %s247_s28, 16, %s249_s15, [#allocation3] }
  0x93   : > { %s253_s23 = scalar_lea.hbm %s2553_s1, %s878_s5  ;;  %s269_s8 = scalar_lea.hbm %s2553_s1, %s879_s29 }
  0x94   : > { %s262_s14 = sshll.u32 %s253_s23, 4  ;;  %s278_s4 = sshll.u32 %s269_s8, 4  ;;  %s263_s14 = int_to_ptr.hbm [resolvable:$true] %s262_s14  ;;  %s279_s4 = int_to_ptr.hbm [resolvable:$true] %s278_s4 }
  0x95   : > { %s1268_s12 = sshra.s32 %s263_s14, 4  ;;  %s1269_s12 = int_to_ptr.hbm [resolvable:$true] %s1268_s12 }
  0x96   : > { %s1270_s20 = scalar_lea.hbm %s1269_s12, 1  ;;  %p1275_p3 = scmp.lt.s32.totalorder %s1269_s12, %s2553_s1 }
  0x97   : > { %p1271_p0 = scmp.ne.s32.totalorder %s1269_s12, %s1270_s20  ;;  %p1276_p4 = scmp.lt.s32.totalorder %s2073_s7, %s1270_s20 }
  0x99   : > { %p1272_p1 = pnand %p1271_p0, %p946_p9  ;;  %p1277_p7 = por %p1276_p4, %p1275_p3 }
  0x9b   : > { %p1273_p2 = pneg %p1272_p1 }
  0x9d   : > { %p1278_p8 = pnand %p1277_p7, %p1273_p2 }
  0x9f   : > { %1281 = shalt.err (!%p1278_p8)  }
  0xa0   : > { %928 = dma.hbm_to_vmem [thread:$0]  (%p946_p9), %s263_s14, 16, %s265_s27, [#allocation3] }
  0xa1   : > { %s880_s5 = sld [smem:[#allocation5 + $0xa]]  ;;  %s1296_s29 = sshra.s32 %s279_s4, 4  ;;  %s1297_s29 = int_to_ptr.hbm [resolvable:$true] %s1296_s29 }
  0xa2   : > { %s1298_s11 = scalar_lea.hbm %s1297_s29, 1  ;;  %p1303_p13 = scmp.lt.s32.totalorder %s1297_s29, %s2553_s1 }
  0xa3   : > { %p1299_p10 = scmp.ne.s32.totalorder %s1297_s29, %s1298_s11  ;;  %p1304_p0 = scmp.lt.s32.totalorder %s2073_s7, %s1298_s11 }
  0xa5   : > { %p1300_p11 = pnand %p1299_p10, %p946_p9  ;;  %p1305_p1 = por %p1304_p0, %p1303_p13 }
  0xa7   : > { %p1301_p12 = pneg %p1300_p11 }
  0xa9   : > { %p1306_p2 = pnand %p1305_p1, %p1301_p12 }
  0xab   : > { %1309 = shalt.err (!%p1306_p2)  }
  0xac   : > { %929 = dma.hbm_to_vmem [thread:$0]  (%p946_p9), %s279_s4, 16, %s281_s13, [#allocation3] }
  0xad   : > { %s881_s27 = sld [smem:[#allocation5 + $0xb]]  ;;  %s1960_s23 = smov [#allocation2 + $0xa]  }
  0xae   : > { %s296_s14 = sshll.u32 %s1960_s23, 4  ;;  %s1961_s10 = smov [#allocation2 + $0xb]   ;;  %s297_s14 = int_to_ptr.vmem [resolvable:$true] %s296_s14 }
  0xaf   : > { %s2205_s9 = sshll.u32 %s1961_s10, 4  ;;  %s2208_s8 = sld [smem:[#allocation5 + $0xc]] }
  0xb0   : > { %2571 = sst [smem:[#allocation82_spill]] %s2205_s9  ;;  %s285_s15 = scalar_lea.hbm %s2553_s1, %s880_s5 }
  0xb1   : > { %s294_s28 = sshll.u32 %s285_s15, 4  ;;  %s1962_s29 = smov [#allocation2 + $0xc]   ;;  %s295_s28 = int_to_ptr.hbm [resolvable:$true] %s294_s28 }
  0xb2   : > { %s2213_s13 = sshll.u32 %s1962_s29, 4  ;;  %s1324_s30 = sshra.s32 %s295_s28, 4  ;;  %s1325_s30 = int_to_ptr.hbm [resolvable:$true] %s1324_s30  ;;  %s329_s13 = int_to_ptr.vmem [resolvable:$true] %s2213_s13 }
  0xb3   : > { %s301_s22 = scalar_lea.hbm %s2553_s1, %s881_s27  ;;  %s1326_s23 = scalar_lea.hbm %s1325_s30, 1 }
  0xb4   : > { %p1327_p3 = scmp.ne.s32.totalorder %s1325_s30, %s1326_s23  ;;  %p1331_p8 = scmp.lt.s32.totalorder %s1325_s30, %s2553_s1 }
  0xb5   : > { %p1332_p10 = scmp.lt.s32.totalorder %s2073_s7, %s1326_s23 }
  0xb6   : > { %p1328_p4 = pnand %p1327_p3, %p946_p9 }
  0xb7   : > { %p1333_p11 = por %p1332_p10, %p1331_p8 }
  0xb8   : > { %p1329_p7 = pneg %p1328_p4 }
  0xba   : > { %p1334_p12 = pnand %p1333_p11, %p1329_p7 }
  0xbc   : > { %1337 = shalt.err (!%p1334_p12)  }
  0xbd   : > { %930 = dma.hbm_to_vmem [thread:$0]  (%p946_p9), %s295_s28, 16, %s297_s14, [#allocation3] }
  0xbe   : > { %s310_s5 = sshll.u32 %s301_s22, 4  ;;  %s317_s20 = scalar_lea.hbm %s2553_s1, %s2208_s8  ;;  %s311_s5 = int_to_ptr.hbm [resolvable:$true] %s310_s5 }
  0xbf   : > { %s1352_s9 = sshra.s32 %s311_s5, 4  ;;  %s1353_s9 = int_to_ptr.hbm [resolvable:$true] %s1352_s9 }
  0xc0   : > { %s1354_s15 = scalar_lea.hbm %s1353_s9, 1  ;;  %p1359_p2 = scmp.lt.s32.totalorder %s1353_s9, %s2553_s1 }
  0xc1   : > { %p1355_p13 = scmp.ne.s32.totalorder %s1353_s9, %s1354_s15  ;;  %p1360_p3 = scmp.lt.s32.totalorder %s2073_s7, %s1354_s15 }
  0xc3   : > { %p1356_p0 = pnand %p1355_p13, %p946_p9  ;;  %p1361_p4 = por %p1360_p3, %p1359_p2 }
  0xc5   : > { %p1357_p1 = pneg %p1356_p0 }
  0xc7   : > { %p1362_p7 = pnand %p1361_p4, %p1357_p1 }
  0xc9   : > { %1365 = shalt.err (!%p1362_p7)  }
  0xca   : > { %s2572_s14 = sld [smem:[#allocation82_spill]]  ;;  %s326_s8 = sshll.u32 %s317_s20, 4  ;;  %s327_s8 = int_to_ptr.hbm [resolvable:$true] %s326_s8 }
  0xcb   : > { %s883_s11 = sld [smem:[#allocation5 + $0xd]]  ;;  %s1380_s22 = sshra.s32 %s327_s8, 4  ;;  %s1381_s22 = int_to_ptr.hbm [resolvable:$true] %s1380_s22 }
  0xcc   : > { %s1382_s30 = scalar_lea.hbm %s1381_s22, 1  ;;  %p1387_p12 = scmp.lt.s32.totalorder %s1381_s22, %s2553_s1 }
  0xcd   : > { %p1383_p8 = scmp.ne.s32.totalorder %s1381_s22, %s1382_s30  ;;  %p1388_p13 = scmp.lt.s32.totalorder %s2073_s7, %s1382_s30 }
  0xcf   : > { %p1384_p10 = pnand %p1383_p8, %p946_p9  ;;  %p1389_p0 = por %p1388_p13, %p1387_p12 }
  0xd0   : > { %s2573_s28 = int_to_ptr.vmem [resolvable:$true] %s2572_s14 }
  0xd1   : > { %931 = dma.hbm_to_vmem [thread:$0]  (%p946_p9), %s311_s5, 16, %s2573_s28, [#allocation3] }
  0xd2   : > { %p1385_p11 = pneg %p1384_p10 }
  0xd4   : > { %p1390_p1 = pnand %p1389_p0, %p1385_p11 }
  0xd6   : > { %1393 = shalt.err (!%p1390_p1)  }
  0xd7   : > { %932 = dma.hbm_to_vmem [thread:$0]  (%p946_p9), %s327_s8, 16, %s329_s13, [#allocation3] }
  0xd8   : > { %s1963_s5 = smov [#allocation2 + $0xd]   ;;  %s884_s12 = sld [smem:[#allocation5 + $0xe]] }
  0xd9   : > { %s344_s27 = sshll.u32 %s1963_s5, 4  ;;  %s1964_s20 = smov [#allocation2 + $0xe]   ;;  %s345_s27 = int_to_ptr.vmem [resolvable:$true] %s344_s27 }
  0xda   : > { %s2251_s9 = sshll.u32 %s1964_s20, 4  ;;  %s885_s15 = sld [smem:[#allocation5 + $0xf]]  ;;  %s361_s9 = int_to_ptr.vmem [resolvable:$true] %s2251_s9 }
  0xdb   : > { %s333_s14 = scalar_lea.hbm %s2553_s1, %s883_s11  ;;  %s1965_s22 = smov [#allocation2 + $0xf]  }
  0xdc   : > { %s342_s28 = sshll.u32 %s333_s14, 4  ;;  %s2257_s13 = sshll.u32 %s1965_s22, 4  ;;  %s343_s28 = int_to_ptr.hbm [resolvable:$true] %s342_s28  ;;  %s377_s13 = int_to_ptr.vmem [resolvable:$true] %s2257_s13 }
  0xdd   : > { %s1408_s8 = sshra.s32 %s343_s28, 4  ;;  %s1409_s8 = int_to_ptr.hbm [resolvable:$true] %s1408_s8 }
  0xde   : > { %s1410_s30 = scalar_lea.hbm %s1409_s8, 1  ;;  %p1415_p7 = scmp.lt.s32.totalorder %s1409_s8, %s2553_s1 }
  0xdf   : > { %p1411_p2 = scmp.ne.s32.totalorder %s1409_s8, %s1410_s30  ;;  %p1416_p8 = scmp.lt.s32.totalorder %s2073_s7, %s1410_s30 }
  0xe1   : > { %p1412_p3 = pnand %p1411_p2, %p946_p9  ;;  %p1417_p10 = por %p1416_p8, %p1415_p7 }
  0xe3   : > { %p1413_p4 = pneg %p1412_p3 }
  0xe5   : > { %p1418_p11 = pnand %p1417_p10, %p1413_p4 }
  0xe7   : > { %1421 = shalt.err (!%p1418_p11)  }
  0xe8   : > { %933 = dma.hbm_to_vmem [thread:$0]  (%p946_p9), %s343_s28, 16, %s345_s27, [#allocation3] }
  0xe9   : > { %s349_s20 = scalar_lea.hbm %s2553_s1, %s884_s12  ;;  %s365_s22 = scalar_lea.hbm %s2553_s1, %s885_s15 }
  0xea   : > { %s358_s29 = sshll.u32 %s349_s20, 4  ;;  %s374_s8 = sshll.u32 %s365_s22, 4  ;;  %s359_s29 = int_to_ptr.hbm [resolvable:$true] %s358_s29  ;;  %s375_s8 = int_to_ptr.hbm [resolvable:$true] %s374_s8 }
  0xeb   : > { %s1436_s30 = sshra.s32 %s359_s29, 4  ;;  %s1437_s30 = int_to_ptr.hbm [resolvable:$true] %s1436_s30 }
  0xec   : > { %s1438_s23 = scalar_lea.hbm %s1437_s30, 1  ;;  %p1443_p1 = scmp.lt.s32.totalorder %s1437_s30, %s2553_s1 }
  0xed   : > { %p1439_p12 = scmp.ne.s32.totalorder %s1437_s30, %s1438_s23  ;;  %p1444_p2 = scmp.lt.s32.totalorder %s2073_s7, %s1438_s23 }
  0xef   : > { %p1440_p13 = pnand %p1439_p12, %p946_p9  ;;  %p1445_p3 = por %p1444_p2, %p1443_p1 }
  0xf1   : > { %p1441_p0 = pneg %p1440_p13 }
  0xf3   : > { %p1446_p4 = pnand %p1445_p3, %p1441_p0 }
  0xf5   : > { %1449 = shalt.err (!%p1446_p4)  }
  0xf6   : > { %934 = dma.hbm_to_vmem [thread:$0]  (%p946_p9), %s359_s29, 16, %s361_s9, [#allocation3] }
  0xf7   : > { %s380_s12 = sadd.s32 1, %s2012_s0  ;;  %s1464_s15 = sshra.s32 %s375_s8, 4  ;;  %s1465_s15 = int_to_ptr.hbm [resolvable:$true] %s1464_s15 }
  0xf8   : > { %s1466_s10 = scalar_lea.hbm %s1465_s15, 1  ;;  %p1471_p11 = scmp.lt.s32.totalorder %s1465_s15, %s2553_s1 }
  0xf9   : > { %p1467_p7 = scmp.ne.s32.totalorder %s1465_s15, %s1466_s10  ;;  %p1472_p12 = scmp.lt.s32.totalorder %s2073_s7, %s1466_s10 }
  0xfb   : > { %p1468_p8 = pnand %p1467_p7, %p946_p9  ;;  %p1473_p13 = por %p1472_p12, %p1471_p11 }
  0xfd   : > { %p1469_p10 = pneg %p1468_p8 }
  0xff   : > { %p1474_p0 = pnand %p1473_p13, %p1469_p10 }
 0x101   : > { %1477 = shalt.err (!%p1474_p0)  }
 0x102   : > { %935 = dma.hbm_to_vmem [thread:$0]  (%p946_p9), %s375_s8, 16, %s377_s13, [#allocation3] }
 0x103   : > { %s2296_s9 = scalar_lea.vmem [#allocation9], %s2052_s6  ;;  %p886_p1 = scmp.ge.s32.totalorder %s380_s12, 3 }
 0x105   : > { %384 = sbr.rel (%p886_p1) target bundleno = 479 (0x1df), region = 100 }
 0x10a   : > { %s385_s20 = sand.u32 1, %s380_s12  ;;  %s912_s29 = sshll.u32 %s2012_s0, 4 }
 0x10b   : > { %s2299_s4 = sadd.s32 16, %s912_s29  ;;  %s888_s14 = sshll.u32 %s385_s20, 4 }
 0x10c   : > { %s387_s22 = sld [smem:[#allocation5 + %s2299_s4]]  ;;  %s2302_s30 = scalar_lea.vmem [#allocation2], %s888_s14 }
 0x10d   : > { %s401_s13 = sshll.u32 %s2302_s30, 4  ;;  %s405_s6 = sadd.s32 1, %s2299_s4  ;;  %s402_s13 = int_to_ptr.vmem [resolvable:$true] %s401_s13 }
 0x10e   : > { %s406_s8 = sld [smem:[#allocation5 + %s405_s6]]  ;;  %s772_s23 = scalar_lea.vmem %s2302_s30, 1 [#allocation2] }
 0x10f   : > { %s2307_s27 = sshll.u32 %s772_s23, 4  ;;  %s423_s28 = sadd.s32 2, %s2299_s4 }
 0x110   : > { %2574 = sst [smem:[#allocation83_spill]] %s2307_s27  ;;  %s776_s5 = scalar_lea.vmem %s2302_s30, 2 [#allocation2] }
 0x111   : > { %s424_s12 = sld [smem:[#allocation5 + %s423_s28]]  ;;  %s2315_s14 = sshll.u32 %s776_s5, 4 }
 0x112   : > { %s388_s11 = scalar_lea.hbm %s2553_s1, %s387_s22  ;;  %2575 = sst [smem:[#allocation84_spill]] %s2315_s14 }
 0x113   : > { %s399_s29 = sshll.u32 %s388_s11, 4  ;;  %s2318_s6 = scalar_lea.sflag [#allocation3], %s385_s20  ;;  %s400_s29 = int_to_ptr.hbm [resolvable:$true] %s399_s29 }
 0x114   : > { %s1492_s23 = sshra.s32 %s400_s29, 4  ;;  %s1493_s23 = int_to_ptr.hbm [resolvable:$true] %s1492_s23 }
 0x115   : > { %s1494_s2 = scalar_lea.hbm %s1493_s23, 1  ;;  %p1497_p2 = scmp.lt.s32.totalorder %s1493_s23, %s2553_s1 }
 0x116   : > { %p1495_p9 = scmp.ne.s32.totalorder %s1493_s23, %s1494_s2  ;;  %p1498_p3 = scmp.lt.s32.totalorder %s2073_s7, %s1494_s2 }
 0x118   : > { %p1499_p4 = por %p1498_p3, %p1497_p2 }
 0x11a   : > { %p1500_p7 = pnand %p1499_p4, %p1495_p9 }
 0x11c   : > { %1503 = shalt.err (!%p1500_p7)  }
 0x11d   : > { %404 = dma.hbm_to_vmem [thread:$0]  %s400_s29, 16, %s402_s13, %s2318_s6 }
 0x11e   : > { %s407_s20 = scalar_lea.hbm %s2553_s1, %s406_s8  ;;  %s441_s15 = sadd.s32 3, %s2299_s4 }
 0x11f   : > { %s417_s10 = sshll.u32 %s407_s20, 4  ;;  %s425_s14 = scalar_lea.hbm %s2553_s1, %s424_s12  ;;  %s418_s10 = int_to_ptr.hbm [resolvable:$true] %s417_s10 }
 0x120   : > { %s435_s24 = sshll.u32 %s425_s14, 4  ;;  %s1516_s2 = sshra.s32 %s418_s10, 4  ;;  %s1517_s2 = int_to_ptr.hbm [resolvable:$true] %s1516_s2  ;;  %s436_s24 = int_to_ptr.hbm [resolvable:$true] %s435_s24 }
 0x121   : > { %s1518_s27 = scalar_lea.hbm %s1517_s2, 1  ;;  %p1521_p10 = scmp.lt.s32.totalorder %s1517_s2, %s2553_s1 }
 0x122   : > { %p1519_p8 = scmp.ne.s32.totalorder %s1517_s2, %s1518_s27  ;;  %p1522_p11 = scmp.lt.s32.totalorder %s2073_s7, %s1518_s27 }
 0x124   : > { %p1523_p12 = por %p1522_p11, %p1521_p10 }
 0x126   : > { %p1524_p13 = pnand %p1523_p12, %p1519_p8 }
 0x128   : > { %1527 = shalt.err (!%p1524_p13)  }
 0x129   : > { %s2576_s13 = sld [smem:[#allocation83_spill]]  ;;  %s1540_s29 = sshra.s32 %s436_s24, 4  ;;  %s1541_s29 = int_to_ptr.hbm [resolvable:$true] %s1540_s29 }
 0x12a   : > { %s442_s12 = sld [smem:[#allocation5 + %s441_s15]]  ;;  %s1542_s14 = scalar_lea.hbm %s1541_s29, 1 }
 0x12b   : > { %p1543_p0 = scmp.ne.s32.totalorder %s1541_s29, %s1542_s14  ;;  %p1545_p1 = scmp.lt.s32.totalorder %s1541_s29, %s2553_s1 }
 0x12c   : > { %p1546_p9 = scmp.lt.s32.totalorder %s2073_s7, %s1542_s14 }
 0x12e   : > { %p1547_p2 = por %p1546_p9, %p1545_p1 }
 0x12f   : > { %s2577_s8 = int_to_ptr.vmem [resolvable:$true] %s2576_s13 }
 0x130   : > { %422 = dma.hbm_to_vmem [thread:$0]  %s418_s10, 16, %s2577_s8, %s2318_s6 }
 0x131   : > { %p1548_p3 = pnand %p1547_p2, %p1543_p0 }
 0x133   : > { %1551 = shalt.err (!%p1548_p3)  }
 0x134   : > { %s2578_s18 = sld [smem:[#allocation84_spill]]  ;;  %s780_s15 = scalar_lea.vmem %s2302_s30, 3 [#allocation2] }
 0x135   : > { %s459_s10 = sadd.s32 4, %s2299_s4  ;;  %s455_s11 = sshll.u32 %s780_s15, 4  ;;  %s456_s11 = int_to_ptr.vmem [resolvable:$true] %s455_s11 }
 0x136   : > { %s460_s5 = sld [smem:[#allocation5 + %s459_s10]]  ;;  %s784_s2 = scalar_lea.vmem %s2302_s30, 4 [#allocation2] }
 0x137   : > { %s2349_s27 = sshll.u32 %s784_s2, 4  ;;  %s477_s23 = sadd.s32 5, %s2299_s4  ;;  %s474_s27 = int_to_ptr.vmem [resolvable:$true] %s2349_s27 }
 0x138   : > { %s443_s29 = scalar_lea.hbm %s2553_s1, %s442_s12  ;;  %s2356_s22 = sld [smem:[#allocation5 + %s477_s23]] }
 0x139   : > { %s453_s14 = sshll.u32 %s443_s29, 4  ;;  %s454_s14 = int_to_ptr.hbm [resolvable:$true] %s453_s14 }
 0x13a   : > { %s2579_s20 = int_to_ptr.vmem [resolvable:$true] %s2578_s18  ;;  %s1564_s28 = sshra.s32 %s454_s14, 4  ;;  %s1565_s28 = int_to_ptr.hbm [resolvable:$true] %s1564_s28 }
 0x13b   : > { %440 = dma.hbm_to_vmem [thread:$0]  %s436_s24, 16, %s2579_s20, %s2318_s6 }
 0x13c   : > { %s788_s24 = scalar_lea.vmem %s2302_s30, 5 [#allocation2]  ;;  %s1566_s18 = scalar_lea.hbm %s1565_s28, 1 }
 0x13d   : > { %p1567_p4 = scmp.ne.s32.totalorder %s1565_s28, %s1566_s18  ;;  %p1569_p7 = scmp.lt.s32.totalorder %s1565_s28, %s2553_s1 }
 0x13e   : > { %p1570_p8 = scmp.lt.s32.totalorder %s2073_s7, %s1566_s18 }
 0x140   : > { %p1571_p10 = por %p1570_p8, %p1569_p7 }
 0x142   : > { %p1572_p11 = pnand %p1571_p10, %p1567_p4 }
 0x144   : > { %1575 = shalt.err (!%p1572_p11)  }
 0x145   : > { %458 = dma.hbm_to_vmem [thread:$0]  %s454_s14, 16, %s456_s11, %s2318_s6 }
 0x146   : > { %s461_s2 = scalar_lea.hbm %s2553_s1, %s460_s5  ;;  %s2367_s23 = sshll.u32 %s788_s24, 4  ;;  %s492_s23 = int_to_ptr.vmem [resolvable:$true] %s2367_s23 }
 0x147   : > { %s471_s13 = sshll.u32 %s461_s2, 4  ;;  %s495_s8 = sadd.s32 6, %s2299_s4  ;;  %s472_s13 = int_to_ptr.hbm [resolvable:$true] %s471_s13 }
 0x148   : > { %s1588_s29 = sshra.s32 %s472_s13, 4  ;;  %s1589_s29 = int_to_ptr.hbm [resolvable:$true] %s1588_s29 }
 0x149   : > { %s1590_s28 = scalar_lea.hbm %s1589_s29, 1  ;;  %p1593_p13 = scmp.lt.s32.totalorder %s1589_s29, %s2553_s1 }
 0x14a   : > { %p1591_p12 = scmp.ne.s32.totalorder %s1589_s29, %s1590_s28  ;;  %p1594_p0 = scmp.lt.s32.totalorder %s2073_s7, %s1590_s28 }
 0x14c   : > { %p1595_p1 = por %p1594_p0, %p1593_p13 }
 0x14e   : > { %p1596_p9 = pnand %p1595_p1, %p1591_p12 }
 0x150   : > { %1599 = shalt.err (!%p1596_p9)  }
 0x151   : > { %476 = dma.hbm_to_vmem [thread:$0]  %s472_s13, 16, %s474_s27, %s2318_s6 }
 0x152   : > { %s479_s14 = scalar_lea.hbm %s2553_s1, %s2356_s22  ;;  %s496_s24 = sld [smem:[#allocation5 + %s495_s8]] }
 0x153   : > { %s489_s15 = sshll.u32 %s479_s14, 4  ;;  %s792_s12 = scalar_lea.vmem %s2302_s30, 6 [#allocation2]  ;;  %s490_s15 = int_to_ptr.hbm [resolvable:$true] %s489_s15 }
 0x154   : > { %s2383_s10 = sshll.u32 %s792_s12, 4  ;;  %s1612_s2 = sshra.s32 %s490_s15, 4  ;;  %s1613_s2 = int_to_ptr.hbm [resolvable:$true] %s1612_s2  ;;  %s510_s10 = int_to_ptr.vmem [resolvable:$true] %s2383_s10 }
 0x155   : > { %s1614_s29 = scalar_lea.hbm %s1613_s2, 1  ;;  %p1617_p3 = scmp.lt.s32.totalorder %s1613_s2, %s2553_s1 }
 0x156   : > { %p1615_p2 = scmp.ne.s32.totalorder %s1613_s2, %s1614_s29  ;;  %p1618_p4 = scmp.lt.s32.totalorder %s2073_s7, %s1614_s29 }
 0x158   : > { %p1619_p7 = por %p1618_p4, %p1617_p3 }
 0x15a   : > { %p1620_p8 = pnand %p1619_p7, %p1615_p2 }
 0x15c   : > { %1623 = shalt.err (!%p1620_p8)  }
 0x15d   : > { %494 = dma.hbm_to_vmem [thread:$0]  %s490_s15, 16, %s492_s23, %s2318_s6 }
 0x15e   : > { %s513_s27 = sadd.s32 7, %s2299_s4  ;;  %s796_s13 = scalar_lea.vmem %s2302_s30, 7 [#allocation2] }
 0x15f   : > { %s514_s22 = sld [smem:[#allocation5 + %s513_s27]]  ;;  %s497_s11 = scalar_lea.hbm %s2553_s1, %s496_s24 }
 0x160   : > { %s507_s5 = sshll.u32 %s497_s11, 4  ;;  %s2398_s14 = sshll.u32 %s796_s13, 4  ;;  %s508_s5 = int_to_ptr.hbm [resolvable:$true] %s507_s5  ;;  %s528_s14 = int_to_ptr.vmem [resolvable:$true] %s2398_s14 }
 0x161   : > { %s531_s12 = sadd.s32 8, %s2299_s4  ;;  %s1636_s2 = sshra.s32 %s508_s5, 4  ;;  %s1637_s2 = int_to_ptr.hbm [resolvable:$true] %s1636_s2 }
 0x162   : > { %s1638_s29 = scalar_lea.hbm %s1637_s2, 1  ;;  %p1641_p11 = scmp.lt.s32.totalorder %s1637_s2, %s2553_s1 }
 0x163   : > { %p1639_p10 = scmp.ne.s32.totalorder %s1637_s2, %s1638_s29  ;;  %p1642_p12 = scmp.lt.s32.totalorder %s2073_s7, %s1638_s29 }
 0x165   : > { %p1643_p13 = por %p1642_p12, %p1641_p11 }
 0x167   : > { %p1644_p0 = pnand %p1643_p13, %p1639_p10 }
 0x169   : > { %1647 = shalt.err (!%p1644_p0)  }
 0x16a   : > { %512 = dma.hbm_to_vmem [thread:$0]  %s508_s5, 16, %s510_s10, %s2318_s6 }
 0x16b   : > { %s532_s23 = sld [smem:[#allocation5 + %s531_s12]]  ;;  %s800_s24 = scalar_lea.vmem %s2302_s30, 8 [#allocation2] }
 0x16c   : > { %s515_s13 = scalar_lea.hbm %s2553_s1, %s514_s22  ;;  %s2411_s20 = sshll.u32 %s800_s24, 4  ;;  %s546_s20 = int_to_ptr.vmem [resolvable:$true] %s2411_s20 }
 0x16d   : > { %s525_s8 = sshll.u32 %s515_s13, 4  ;;  %s549_s11 = sadd.s32 9, %s2299_s4  ;;  %s526_s8 = int_to_ptr.hbm [resolvable:$true] %s525_s8 }
 0x16e   : > { %s1660_s2 = sshra.s32 %s526_s8, 4  ;;  %s1661_s2 = int_to_ptr.hbm [resolvable:$true] %s1660_s2 }
 0x16f   : > { %s1662_s29 = scalar_lea.hbm %s1661_s2, 1  ;;  %p1665_p9 = scmp.lt.s32.totalorder %s1661_s2, %s2553_s1 }
 0x170   : > { %p1663_p1 = scmp.ne.s32.totalorder %s1661_s2, %s1662_s29  ;;  %p1666_p2 = scmp.lt.s32.totalorder %s2073_s7, %s1662_s29 }
 0x172   : > { %p1667_p3 = por %p1666_p2, %p1665_p9 }
 0x174   : > { %p1668_p4 = pnand %p1667_p3, %p1663_p1 }
 0x176   : > { %1671 = shalt.err (!%p1668_p4)  }
 0x177   : > { %530 = dma.hbm_to_vmem [thread:$0]  %s526_s8, 16, %s528_s14, %s2318_s6 }
 0x178   : > { %s550_s10 = sld [smem:[#allocation5 + %s549_s11]]  ;;  %s804_s22 = scalar_lea.vmem %s2302_s30, 9 [#allocation2] }
 0x179   : > { %s533_s24 = scalar_lea.hbm %s2553_s1, %s532_s23  ;;  %s2424_s27 = sshll.u32 %s804_s22, 4  ;;  %s564_s27 = int_to_ptr.vmem [resolvable:$true] %s2424_s27 }
 0x17a   : > { %s543_s15 = sshll.u32 %s533_s24, 4  ;;  %s567_s13 = sadd.s32 10, %s2299_s4  ;;  %s544_s15 = int_to_ptr.hbm [resolvable:$true] %s543_s15 }
 0x17b   : > { %s1684_s2 = sshra.s32 %s544_s15, 4  ;;  %s1685_s2 = int_to_ptr.hbm [resolvable:$true] %s1684_s2 }
 0x17c   : > { %s1686_s29 = scalar_lea.hbm %s1685_s2, 1  ;;  %p1689_p8 = scmp.lt.s32.totalorder %s1685_s2, %s2553_s1 }
 0x17d   : > { %p1687_p7 = scmp.ne.s32.totalorder %s1685_s2, %s1686_s29  ;;  %p1690_p10 = scmp.lt.s32.totalorder %s2073_s7, %s1686_s29 }
 0x17f   : > { %p1691_p11 = por %p1690_p10, %p1689_p8 }
 0x181   : > { %p1692_p12 = pnand %p1691_p11, %p1687_p7 }
 0x183   : > { %1695 = shalt.err (!%p1692_p12)  }
 0x184   : > { %548 = dma.hbm_to_vmem [thread:$0]  %s544_s15, 16, %s546_s20, %s2318_s6 }
 0x185   : > { %s568_s14 = sld [smem:[#allocation5 + %s567_s13]]  ;;  %s808_s23 = scalar_lea.vmem %s2302_s30, 10 [#allocation2] }
 0x186   : > { %s551_s22 = scalar_lea.hbm %s2553_s1, %s550_s10  ;;  %s2437_s12 = sshll.u32 %s808_s23, 4  ;;  %s582_s12 = int_to_ptr.vmem [resolvable:$true] %s2437_s12 }
 0x187   : > { %s561_s5 = sshll.u32 %s551_s22, 4  ;;  %s585_s24 = sadd.s32 11, %s2299_s4  ;;  %s562_s5 = int_to_ptr.hbm [resolvable:$true] %s561_s5 }
 0x188   : > { %s1708_s2 = sshra.s32 %s562_s5, 4  ;;  %s1709_s2 = int_to_ptr.hbm [resolvable:$true] %s1708_s2 }
 0x189   : > { %s1710_s29 = scalar_lea.hbm %s1709_s2, 1  ;;  %p1713_p0 = scmp.lt.s32.totalorder %s1709_s2, %s2553_s1 }
 0x18a   : > { %p1711_p13 = scmp.ne.s32.totalorder %s1709_s2, %s1710_s29  ;;  %p1714_p1 = scmp.lt.s32.totalorder %s2073_s7, %s1710_s29 }
 0x18c   : > { %p1715_p9 = por %p1714_p1, %p1713_p0 }
 0x18e   : > { %p1716_p2 = pnand %p1715_p9, %p1711_p13 }
 0x190   : > { %1719 = shalt.err (!%p1716_p2)  }
 0x191   : > { %566 = dma.hbm_to_vmem [thread:$0]  %s562_s5, 16, %s564_s27, %s2318_s6 }
 0x192   : > { %s586_s20 = sld [smem:[#allocation5 + %s585_s24]]  ;;  %s812_s10 = scalar_lea.vmem %s2302_s30, 11 [#allocation2] }
 0x193   : > { %s569_s23 = scalar_lea.hbm %s2553_s1, %s568_s14  ;;  %s2450_s11 = sshll.u32 %s812_s10, 4  ;;  %s600_s11 = int_to_ptr.vmem [resolvable:$true] %s2450_s11 }
 0x194   : > { %s579_s8 = sshll.u32 %s569_s23, 4  ;;  %s603_s22 = sadd.s32 12, %s2299_s4  ;;  %s580_s8 = int_to_ptr.hbm [resolvable:$true] %s579_s8 }
 0x195   : > { %s1732_s2 = sshra.s32 %s580_s8, 4  ;;  %s1733_s2 = int_to_ptr.hbm [resolvable:$true] %s1732_s2 }
 0x196   : > { %s1734_s29 = scalar_lea.hbm %s1733_s2, 1  ;;  %p1737_p4 = scmp.lt.s32.totalorder %s1733_s2, %s2553_s1 }
 0x197   : > { %p1735_p3 = scmp.ne.s32.totalorder %s1733_s2, %s1734_s29  ;;  %p1738_p7 = scmp.lt.s32.totalorder %s2073_s7, %s1734_s29 }
 0x199   : > { %p1739_p8 = por %p1738_p7, %p1737_p4 }
 0x19b   : > { %p1740_p10 = pnand %p1739_p8, %p1735_p3 }
 0x19d   : > { %1743 = shalt.err (!%p1740_p10)  }
 0x19e   : > { %584 = dma.hbm_to_vmem [thread:$0]  %s580_s8, 16, %s582_s12, %s2318_s6 }
 0x19f   : > { %s604_s27 = sld [smem:[#allocation5 + %s603_s22]]  ;;  %s816_s14 = scalar_lea.vmem %s2302_s30, 12 [#allocation2] }
 0x1a0   : > { %s587_s10 = scalar_lea.hbm %s2553_s1, %s586_s20  ;;  %s2463_s13 = sshll.u32 %s816_s14, 4  ;;  %s618_s13 = int_to_ptr.vmem [resolvable:$true] %s2463_s13 }
 0x1a1   : > { %s597_s15 = sshll.u32 %s587_s10, 4  ;;  %s621_s23 = sadd.s32 13, %s2299_s4  ;;  %s598_s15 = int_to_ptr.hbm [resolvable:$true] %s597_s15 }
 0x1a2   : > { %s1756_s2 = sshra.s32 %s598_s15, 4  ;;  %s1757_s2 = int_to_ptr.hbm [resolvable:$true] %s1756_s2 }
 0x1a3   : > { %s1758_s29 = scalar_lea.hbm %s1757_s2, 1  ;;  %p1761_p12 = scmp.lt.s32.totalorder %s1757_s2, %s2553_s1 }
 0x1a4   : > { %p1759_p11 = scmp.ne.s32.totalorder %s1757_s2, %s1758_s29  ;;  %p1762_p13 = scmp.lt.s32.totalorder %s2073_s7, %s1758_s29 }
 0x1a6   : > { %p1763_p0 = por %p1762_p13, %p1761_p12 }
 0x1a8   : > { %p1764_p1 = pnand %p1763_p0, %p1759_p11 }
 0x1aa   : > { %1767 = shalt.err (!%p1764_p1)  }
 0x1ab   : > { %602 = dma.hbm_to_vmem [thread:$0]  %s598_s15, 16, %s600_s11, %s2318_s6 }
 0x1ac   : > { %s622_s12 = sld [smem:[#allocation5 + %s621_s23]]  ;;  %s820_s20 = scalar_lea.vmem %s2302_s30, 13 [#allocation2] }
 0x1ad   : > { %s605_s14 = scalar_lea.hbm %s2553_s1, %s604_s27  ;;  %s2476_s24 = sshll.u32 %s820_s20, 4  ;;  %s636_s24 = int_to_ptr.vmem [resolvable:$true] %s2476_s24 }
 0x1ae   : > { %s615_s5 = sshll.u32 %s605_s14, 4  ;;  %s639_s10 = sadd.s32 14, %s2299_s4  ;;  %s616_s5 = int_to_ptr.hbm [resolvable:$true] %s615_s5 }
 0x1af   : > { %s1780_s2 = sshra.s32 %s616_s5, 4  ;;  %s1781_s2 = int_to_ptr.hbm [resolvable:$true] %s1780_s2 }
 0x1b0   : > { %s1782_s29 = scalar_lea.hbm %s1781_s2, 1  ;;  %p1785_p2 = scmp.lt.s32.totalorder %s1781_s2, %s2553_s1 }
 0x1b1   : > { %p1783_p9 = scmp.ne.s32.totalorder %s1781_s2, %s1782_s29  ;;  %p1786_p3 = scmp.lt.s32.totalorder %s2073_s7, %s1782_s29 }
 0x1b3   : > { %p1787_p4 = por %p1786_p3, %p1785_p2 }
 0x1b5   : > { %p1788_p7 = pnand %p1787_p4, %p1783_p9 }
 0x1b7   : > { %1791 = shalt.err (!%p1788_p7)  }
 0x1b8   : > { %620 = dma.hbm_to_vmem [thread:$0]  %s616_s5, 16, %s618_s13, %s2318_s6 }
 0x1b9   : > { %s640_s11 = sld [smem:[#allocation5 + %s639_s10]]  ;;  %s824_s27 = scalar_lea.vmem %s2302_s30, 14 [#allocation2] }
 0x1ba   : > { %s623_s20 = scalar_lea.hbm %s2553_s1, %s622_s12  ;;  %s2489_s22 = sshll.u32 %s824_s27, 4  ;;  %s654_s22 = int_to_ptr.vmem [resolvable:$true] %s2489_s22 }
 0x1bb   : > { %s633_s8 = sshll.u32 %s623_s20, 4  ;;  %s657_s14 = sadd.s32 15, %s2299_s4  ;;  %s634_s8 = int_to_ptr.hbm [resolvable:$true] %s633_s8 }
 0x1bc   : > { %s1804_s2 = sshra.s32 %s634_s8, 4  ;;  %s1805_s2 = int_to_ptr.hbm [resolvable:$true] %s1804_s2 }
 0x1bd   : > { %s1806_s29 = scalar_lea.hbm %s1805_s2, 1  ;;  %p1809_p10 = scmp.lt.s32.totalorder %s1805_s2, %s2553_s1 }
 0x1be   : > { %p1807_p8 = scmp.ne.s32.totalorder %s1805_s2, %s1806_s29  ;;  %p1810_p11 = scmp.lt.s32.totalorder %s2073_s7, %s1806_s29 }
 0x1c0   : > { %p1811_p12 = por %p1810_p11, %p1809_p10 }
 0x1c2   : > { %p1812_p13 = pnand %p1811_p12, %p1807_p8 }
 0x1c4   : > { %1815 = shalt.err (!%p1812_p13)  }
 0x1c5   : > { %638 = dma.hbm_to_vmem [thread:$0]  %s634_s8, 16, %s636_s24, %s2318_s6 }
 0x1c6   : > { %s658_s13 = sld [smem:[#allocation5 + %s657_s14]]  ;;  %s828_s12 = scalar_lea.vmem %s2302_s30, 15 [#allocation2] }
 0x1c7   : > { %s641_s10 = scalar_lea.hbm %s2553_s1, %s640_s11  ;;  %s671_s15 = sshll.u32 %s828_s12, 4  ;;  %s672_s15 = int_to_ptr.vmem [resolvable:$true] %s671_s15 }
 0x1c8   : > { %s651_s27 = sshll.u32 %s641_s10, 4  ;;  %s652_s27 = int_to_ptr.hbm [resolvable:$true] %s651_s27 }
 0x1c9   : > { %s1828_s23 = sshra.s32 %s652_s27, 4  ;;  %s1829_s23 = int_to_ptr.hbm [resolvable:$true] %s1828_s23 }
 0x1ca   : > { %s1830_s20 = scalar_lea.hbm %s1829_s23, 1  ;;  %p1833_p1 = scmp.lt.s32.totalorder %s1829_s23, %s2553_s1 }
 0x1cb   : > { %p1831_p0 = scmp.ne.s32.totalorder %s1829_s23, %s1830_s20  ;;  %p1834_p9 = scmp.lt.s32.totalorder %s2073_s7, %s1830_s20 }
 0x1cd   : > { %p1835_p2 = por %p1834_p9, %p1833_p1 }
 0x1cf   : > { %p1836_p3 = pnand %p1835_p2, %p1831_p0 }
 0x1d1   : > { %1839 = shalt.err (!%p1836_p3)  }
 0x1d2   : > { %656 = dma.hbm_to_vmem [thread:$0]  %s652_s27, 16, %s654_s22, %s2318_s6 }
 0x1d3   : > { %s659_s11 = scalar_lea.hbm %s2553_s1, %s658_s13 }
 0x1d4   : > { %s669_s8 = sshll.u32 %s659_s11, 4  ;;  %s670_s8 = int_to_ptr.hbm [resolvable:$true] %s669_s8 }
 0x1d5   : > { %s1852_s14 = sshra.s32 %s670_s8, 4  ;;  %s1853_s14 = int_to_ptr.hbm [resolvable:$true] %s1852_s14 }
 0x1d6   : > { %s1854_s28 = scalar_lea.hbm %s1853_s14, 1  ;;  %p1857_p7 = scmp.lt.s32.totalorder %s1853_s14, %s2553_s1 }
 0x1d7   : > { %p1855_p4 = scmp.ne.s32.totalorder %s1853_s14, %s1854_s28  ;;  %p1858_p8 = scmp.lt.s32.totalorder %s2073_s7, %s1854_s28 }
 0x1d9   : > { %p1859_p10 = por %p1858_p8, %p1857_p7 }
 0x1db   : > { %p1860_p11 = pnand %p1859_p10, %p1855_p4 }
 0x1dd   : > { %1863 = shalt.err (!%p1860_p11)  }
 0x1de   : > { %674 = dma.hbm_to_vmem [thread:$0]  %s670_s8, 16, %s672_s15, %s2318_s6 }
 0x1df PF: > { %s675_s22 = sand.u32 1, %s2012_s0 }
 0x1e0   : > { %s904_s13 = sshll.u32 %s675_s22, 4  ;;  %s678_s5 = scalar_lea.sflag [#allocation3], %s675_s22 }
 0x1e1   : > { %s677_s4 = scalar_lea.vmem [#allocation2], %s904_s13 }
 0x1e2   : > { %1926 = dma.done.wait %s678_s5, 256 }
 0x1e3   : > { %1927 = vsyncadd %s678_s5, 4294967040  ;;  %s914_s10 = sshll.u32 %s2012_s0, 4  ;;  %s703_s20 = sshll.u32 %s2296_s9, 4  ;;  %v683_v0 = vld [vmem:[%s677_s4] sm:$0xff]  ;;  %v684_v2 = vld [vmem:[%s677_s4 + $0x8] sm:$0xff]  ;;  %s704_s20 = int_to_ptr.vmem [resolvable:$true] %s703_s20 }
 0x1e4   : > { %s702_s23 = scalar_lea.hbm %s2555_s3, %s914_s10  ;;  %v685_v1 = vld [vmem:[#allocation6] sm:$0xff]  ;;  %s2580_s15 = sand.u32 1, %s1938_s17  }
 0x1e5   : > { %s705_s6 = sshll.u32 %s702_s23, 4  ;;  %v686_v3 = vadd.f32 %v685_v1, %v683_v0  ;;  %v687_v4 = vadd.f32 %v685_v1, %v684_v2  ;;  %s691_s2 = scalar_lea.sflag [#allocation8], %s2580_s15  ;;  %s706_s6 = int_to_ptr.hbm [resolvable:$true] %s705_s6 }
 0x1e6   : > { %s1890_s29 = sshra.s32 %s706_s6, 4  ;;  %s1896_s11 = scalar_lea.hbm %s2555_s3, 48  ;;  %s1891_s29 = int_to_ptr.hbm [resolvable:$true] %s1890_s29 }
 0x1e7   : > { %688 = vst [vmem:[%s2296_s9] sm:$0xff] %v686_v3  ;;  %s1892_s0 = scalar_lea.hbm %s1891_s29, 16  ;;  %p1897_p1 = scmp.lt.s32.totalorder %s1891_s29, %s2555_s3 }
 0x1e8   : > { %689 = vst [vmem:[%s2296_s9 + $0x8] sm:$0xff] %v687_v4  ;;  %p1893_p12 = scmp.ne.s32.totalorder %s1891_s29, %s1892_s0  ;;  %p1898_p9 = scmp.lt.s32.totalorder %s1896_s11, %s1892_s0 }
 0x1ea   : > { %p1894_p13 = pnand %p1893_p12, %p2029_p5  ;;  %p1899_p2 = por %p1898_p9, %p1897_p1 }
 0x1ec   : > { %p1895_p0 = pneg %p1894_p13 }
 0x1ee   : > { %p1900_p3 = pnand %p1899_p2, %p1895_p0 }
 0x1f0   : > { %1903 = shalt.err (!%p1900_p3)
}
 0x1f1   : > { %s1966_s9 = smov 128   ;;  %s1967_s28 = smov 8  }
 0x1f2   : > { %936 = dma.vmem_to_hbm [thread:$0]  (%p2029_p5), %s704_s20, 256, %s706_s6, %s691_s2, %s1966_s9, %s1966_s9, %s1967_s28  }
 0x1f3 PF: > { %p949_p4 = scmp.ge.s32.totalorder %s1946_s19, 2  ;;  %s720_s18 = sand.u32 1, %s1934_s16  }
 0x1f4   : > { %s721_s12 = scalar_lea.sflag [#allocation8], %s720_s18 }
 0x1f5   : > { %p943_p7 = pnand %p949_p4, %p2033_p6 }
 0x1f7   : > { %p944_p8 = pneg %p943_p7 }
 0x1f9   : > { %1929 = dma.done.wait (%p944_p8), %s721_s12, 256  }
 0x1fa   : > { %1931 = vsyncadd (%p944_p8), %s721_s12, 4294967040  ;;  %s2581_s22 = sld [smem:[#allocation80_spill]]  ;;  %p22_p10 = scmp.ge.s32.totalorder %s2016_s21, 5  }
 0x1fb   : > { %s2582_s18 = sld [smem:[#allocation81_spill]]  ;;  %s2583_s16 = smov %s1938_s17 }
 0x1fc   : > { %s2585_s19 = smov %s2016_s21  ;;  %24 = sbr.rel (!%p22_p10) target bundleno = 10 (0xa), region = 264 }
 0x200   : > { %s2584_s17 = smov %s2581_s22 }
 0x201   :  { %727 = vsyncpa [#allocation7], 1 }
 0x202   :  { %729 = vsyncpa [#allocation7 + $0x1], 1 }
 0x203   :  { %730 = vsyncpa [#allocation8], 1 }
 0x204   :  { %732 = vsyncpa [#allocation8 + $0x1], 1 }
 0x205   :  { %733 = vsyncmov [#allocation3] }
 0x208   :  { %s734_s19 = vpop.sfrf %733 }
 0x209   :  { %p910_p5 = scmp.ne.s32.totalorder %s734_s19, 0 }
 0x20b   :  { %738 = shalt.err (%p910_p5)  }
 0x20c   :  { %740 = vsyncmov [#allocation3 + $0x1] }
 0x20f   :  { %s741_s25 = vpop.sfrf %740 }
 0x210   :  { %p911_p6 = scmp.ne.s32.totalorder %s741_s25, 0 }
 0x212   :  { %745 = shalt.err (%p911_p6)  }

</bundles_post_ra>
